<compile_context>
chip_gen: v6e
topology: v6e:2x2x1
jax: 0.10.0
libtpu: 0.0.40
codegen_flags: <defaults>
</compile_context>

<pallas_src>
import functools

import jax
import jax.numpy as jnp
from jax import lax
from jax.experimental import pallas as pl
from jax.experimental.pallas import tpu as pltpu

LANE = 128  # TPU vreg lane width


def _round_up(n, m):
    return ((n + m - 1) // m) * m


def _pad_axis(a, axis, new_size):
    if a.shape[axis] == new_size:
        return a
    pads = [(0, 0)] * a.ndim
    pads[axis] = (0, new_size - a.shape[axis])
    return jnp.pad(a, pads)


def _vmem_limit_bytes():
    """Generation-aware VMEM limit: ~75% of physical VMEM, capped at 112 MiB."""
    cap = None
    try:
        info = pltpu.get_tpu_info()
        for name in ("vmem_capacity_bytes", "vmem_size_bytes", "vmem_bytes"):
            cap = getattr(info, name, None)
            if cap:
                break
    except Exception:
        cap = None
    if not cap:
        cap = 64 * 1024 * 1024  # assume the smallest generation (v7x) if unknown
    return int(min(cap * 3 // 4, 112 * 1024 * 1024))


@functools.lru_cache(maxsize=None)
def _single_buffer_supported():
    """Probe once whether pipeline_mode=pl.Buffered(1) lowers on this backend.

    Grid-invariant operands don't need double-buffering; single-buffering them
    halves their VMEM footprint. Fall back gracefully on JAX versions where the
    Mosaic pallas_call path does not accept pipeline_mode.
    """
    try:
        spec = pl.BlockSpec((8, 128), lambda i: (0, 0), pipeline_mode=pl.Buffered(1))
    except Exception:
        return False
    try:
        def _k(x_ref, o_ref):
            o_ref[...] = x_ref[...] + 1.0
        out = pl.pallas_call(
            _k,
            out_shape=jax.ShapeDtypeStruct((16, 128), jnp.float32),
            grid=(2,),
            in_specs=[spec],
            out_specs=pl.BlockSpec((8, 128), lambda i: (i, 0)),
        )(jnp.zeros((8, 128), jnp.float32))
        jax.block_until_ready(out)
        return True
    except Exception:
        return False


def _const_spec(shape):
    """BlockSpec for a grid-invariant operand (single-buffered if supported)."""
    index_map = lambda b, r: (0,) * len(shape)
    if _single_buffer_supported():
        return pl.BlockSpec(shape, index_map, pipeline_mode=pl.Buffered(1))
    return pl.BlockSpec(shape, index_map)


def across_kernel(x_ref, w1_ref, s1_ref, b1_ref, w2_ref, s2_ref, b2_ref,
                  o_ref, mid_ref):
    """Fused (conv -> BN -> ReLU) x 2 for one (batch, output-row-tile) step.

    x_ref:   (1, Hm, Wm, K1*K1*Cin)  stage-1 im2col input, whole (padded) image
    w1_ref:  (K1*K1*Cin, Cmid_p)     stage-1 weights as an im2col matrix
    s1/b1:   (1, Cmid_p) f32         folded BN scale / bias (includes conv bias)
    w2_ref:  (K2*K2*Cmid_p, Cout_p)  stage-2 weights as an im2col matrix
    s2/b2:   (1, Cout_p) f32
    o_ref:   (1, TR2, Wt, Cout_p)    output row tile
    mid_ref: (TR1, Wm, Cmid_p)       VMEM scratch; TR1 = TR2 + K2 - 1
    """
    TR1, Wm, Cmid = mid_ref.shape
    _, TR2, Wt, Cout = o_ref.shape
    K2 = TR1 - TR2 + 1
    assert w2_ref.shape[0] == K2 * K2 * Cmid

    # Output-row tile handled by this step; halo rows come from the
    # batch-resident input block via a dynamic row slice.
    row0 = pl.multiple_of(pl.program_id(1) * TR2, TR2)

    # ---- stage 1: one MXU matmul (K = K1*K1*Cin) + folded-BN affine + ReLU ----
    xs = x_ref[0, pl.ds(row0, TR1), :, :]                  # (TR1, Wm, K1*K1*Cin)
    acc1 = jnp.dot(xs.reshape(TR1 * Wm, -1), w1_ref[...],
                   preferred_element_type=jnp.float32)
    y1 = jnp.maximum(acc1 * s1_ref[0] + b1_ref[0], 0.0)    # f32 affine + ReLU
    mid_ref[...] = y1.reshape(TR1, Wm, Cmid).astype(mid_ref.dtype)

    # ---- stage 2: in-VMEM im2col (K = K2*K2*Cmid_p) + one MXU matmul + BN + ReLU
    # TODO(synk): for very large Cmid, chunk taps in lane-pairs (K=2*Cmid_p) and
    # accumulate, to bound the im2col temporary instead of one full concat.
    taps = [mid_ref[kh:kh + TR2, kw:kw + Wt, :].reshape(TR2 * Wt, Cmid)
            for kh in range(K2) for kw in range(K2)]
    patches = jnp.concatenate(taps, axis=-1)               # (TR2*Wt, K2*K2*Cmid)
    acc2 = jnp.dot(patches, w2_ref[...], preferred_element_type=jnp.float32)
    y2 = jnp.maximum(acc2 * s2_ref[0] + b2_ref[0], 0.0)
    o_ref[0] = y2.reshape(TR2, Wt, Cout).astype(o_ref.dtype)


def across_pallas(xcol, w1m, s1, b1, w2m, s2, b2, *,
                  k2, row_tile, out_rows, out_width, out_dtype, vmem_limit):
    """One fused pallas_call over (batch, output-row tiles)."""
    B, Hm, Wm, C1 = xcol.shape
    _, Cmid_p = w1m.shape
    _, Cout_p = w2m.shape
    TR2 = row_tile
    TR1 = TR2 + k2 - 1
    NR = out_rows // TR2

    return pl.pallas_call(
        across_kernel,
        out_shape=jax.ShapeDtypeStruct((B, out_rows, out_width, Cout_p), out_dtype),
        grid=(B, NR),
        in_specs=[
            # Whole (im2col'd) image of one batch element; the block index does
            # not depend on the row-tile axis, so it is fetched once per batch
            # element and the kernel slices its halo'd row window from it.
            pl.BlockSpec((1, Hm, Wm, C1), lambda b, r: (b, 0, 0, 0)),
            _const_spec(w1m.shape),
            _const_spec(s1.shape),
            _const_spec(b1.shape),
            _const_spec(w2m.shape),
            _const_spec(s2.shape),
            _const_spec(b2.shape),
        ],
        out_specs=pl.BlockSpec((1, TR2, out_width, Cout_p),
                               lambda b, r: (b, r, 0, 0)),
        scratch_shapes=[pltpu.VMEM((TR1, Wm, Cmid_p), xcol.dtype)],
        compiler_params=pltpu.CompilerParams(
            dimension_semantics=("parallel", "parallel"),
            vmem_limit_bytes=vmem_limit,
        ),
    )(xcol, w1m, s1, b1, w2m, s2, b2)


def fold_bn(conv_bias, gamma, beta, running_mean, running_var, eps=1e-5):
    """Fold conv bias + eval-mode BatchNorm into per-channel scale/bias."""
    scale = gamma / jnp.sqrt(running_var + eps)
    bias = beta + scale * (conv_bias - running_mean)
    return scale, bias


@functools.partial(jax.jit, static_argnames=("compute_dtype", "row_tile"))
def across_forward_nhwc(x_nhwc, params, compute_dtype=jnp.float32, row_tile=8):
    """NHWC end-to-end forward (no layout transposes in the hot path)."""
    B, H, W, Cin = x_nhwc.shape
    K1 = params["w1"].shape[0]
    K2 = params["w2"].shape[0]
    Cmid = params["w1"].shape[3]
    Cout = params["w2"].shape[3]
    Cmid_p = _round_up(Cmid, LANE)
    Cout_p = _round_up(Cout, LANE)

    Ho1, Wo1 = H - K1 + 1, W - K1 + 1
    Ho2, Wo2 = Ho1 - K2 + 1, Wo1 - K2 + 1
    assert Ho2 >= 1 and Wo2 >= 1

    # Sublane multiple for the compute dtype (8 for f32, 16 for bf16): W-ish
    # dims padded to it make the in-kernel reshapes layout-preserving.
    sub = (8 * 4) // jnp.dtype(compute_dtype).itemsize

    TR2 = max(1, min(row_tile, Ho2))        # stage-2 output rows per grid step
    Ho2p = _round_up(Ho2, TR2)              # padded output rows (grid multiple)
    Wt = _round_up(Wo2, sub)                # stage-2 computed width
    Hm = Ho2p + K2 - 1                      # stage-1 rows needed
    Wm = _round_up(Wt + K2 - 1, sub)        # stage-1 computed width
    Hp = Hm + K1 - 1                        # zero-padded input spatial dims
    Wp = Wm + K1 - 1

    s1, b1 = fold_bn(params["b1"], params["g1"], params["be1"],
                     params["m1"], params["v1"])
    s2, b2 = fold_bn(params["b2"], params["g2"], params["be2"],
                     params["m2"], params["v2"])

    cdt = compute_dtype
    # Weights as lane-padded im2col matrices. Padded scale/bias lanes are zero,
    # so padded mid channels are ReLU(0)=0 and padded output channels are
    # sliced off below; padded w2 rows are zero so they contribute nothing.
    w1m = _pad_axis(params["w1"], 3, Cmid_p).reshape(K1 * K1 * Cin, Cmid_p).astype(cdt)
    w2m = _pad_axis(_pad_axis(params["w2"], 2, Cmid_p), 3, Cout_p)
    w2m = w2m.reshape(K2 * K2 * Cmid_p, Cout_p).astype(cdt)
    s1 = _pad_axis(s1, 0, Cmid_p).reshape(1, Cmid_p).astype(jnp.float32)
    b1 = _pad_axis(b1, 0, Cmid_p).reshape(1, Cmid_p).astype(jnp.float32)
    s2 = _pad_axis(s2, 0, Cout_p).reshape(1, Cout_p).astype(jnp.float32)
    b2 = _pad_axis(b2, 0, Cout_p).reshape(1, Cout_p).astype(jnp.float32)

    # Stage-1 im2col in XLA (zero-padded right/bottom, so valid outputs are
    # untouched and the extra rows/cols are sliced off at the end).
    xp = jnp.pad(x_nhwc, ((0, 0), (0, Hp - H), (0, Wp - W), (0, 0))).astype(cdt)
    xcol = jnp.concatenate(
        [xp[:, kh:kh + Hm, kw:kw + Wm, :] for kh in range(K1) for kw in range(K1)],
        axis=-1)                                           # (B, Hm, Wm, K1*K1*Cin)

    y = across_pallas(xcol, w1m, s1, b1, w2m, s2, b2,
                      k2=K2, row_tile=TR2, out_rows=Ho2p, out_width=Wt,
                      out_dtype=cdt, vmem_limit=_vmem_limit_bytes())
    return y[:, :Ho2, :Wo2, :Cout]          # drop row/col/lane padding


@functools.partial(jax.jit, static_argnames=("compute_dtype", "row_tile"))
def across_forward(x_nchw, params, compute_dtype=jnp.float32, row_tile=8):
    """PyTorch-compatible NCHW wrapper (transposes only at the boundary)."""
    x = jnp.transpose(x_nchw, (0, 2, 3, 1))                    # NCHW -> NHWC
    y = across_forward_nhwc(x, params, compute_dtype=compute_dtype,
                            row_tile=row_tile)
    return jnp.transpose(y, (0, 3, 1, 2)).astype(jnp.float32)  # NHWC -> NCHW


def init_params(key, in_channels, mid_channels, out_channels, kernel):
    ks = jax.random.split(key, 10)

    def conv_w(k, cin, cout):
        # HWIO layout, matching the kernel.
        fan_in = cin * kernel * kernel
        bound = 1.0 / jnp.sqrt(fan_in)
        return jax.random.uniform(k, (kernel, kernel, cin, cout),
                                  jnp.float32, -bound, bound)

    return {
        "w1": conv_w(ks[0], in_channels, mid_channels),
        "b1": jax.random.uniform(ks[1], (mid_channels,), jnp.float32, -0.1, 0.1),
        "g1": 1.0 + 0.1 * jax.random.normal(ks[2], (mid_channels,), jnp.float32),
        "be1": 0.1 * jax.random.normal(ks[3], (mid_channels,), jnp.float32),
        "m1": 0.05 * jax.random.normal(ks[4], (mid_channels,), jnp.float32),
        "v1": 1.0 + 0.1 * jax.random.uniform(ks[5], (mid_channels,), jnp.float32),
        "w2": conv_w(ks[6], mid_channels, out_channels),
        "b2": jax.random.uniform(ks[7], (out_channels,), jnp.float32, -0.1, 0.1),
        "g2": 1.0 + 0.1 * jax.random.normal(ks[8], (out_channels,), jnp.float32),
        "be2": 0.1 * jax.random.normal(ks[9], (out_channels,), jnp.float32),
        "m2": jnp.zeros((out_channels,), jnp.float32),
        "v2": jnp.ones((out_channels,), jnp.float32),
    }


def reference_forward(x_nchw, params):
    """Pure-JAX reference (lax.conv) for validation."""
    def stage(x, w_hwio, b, g, be, m, v):
        y = lax.conv_general_dilated(
            x, w_hwio, window_strides=(1, 1), padding="VALID",
            dimension_numbers=("NCHW", "HWIO", "NCHW"))
        y = y + b[None, :, None, None]
        y = (y - m[None, :, None, None]) / jnp.sqrt(v[None, :, None, None] + 1e-5)
        y = y * g[None, :, None, None] + be[None, :, None, None]
        return jnp.maximum(y, 0.0)

    y = stage(x_nchw, params["w1"], params["b1"], params["g1"],
              params["be1"], params["m1"], params["v1"])
    y = stage(y, params["w2"], params["b2"], params["g2"],
              params["be2"], params["m2"], params["v2"])
    return y


if __name__ == "__main__":
    key = jax.random.PRNGKey(0)
    k_x, k_p = jax.random.split(key)

    batch, in_channels, mid_channels, out_channels, kernel, spatial = 2, 4, 8, 8, 3, 16
    x = jax.random.normal(k_x, (batch, in_channels, spatial, spatial), jnp.float32)
    params = init_params(k_p, in_channels, mid_channels, out_channels, kernel)

    # f32 path (tight tolerance)
    out = jax.block_until_ready(across_forward(x, params))
    ref = reference_forward(x, params)

    out_spatial = spatial - 2 * (kernel - 1)
    assert out.shape == ref.shape == (batch, out_channels, out_spatial, out_spatial)
    assert jnp.allclose(out, ref, atol=1e-4, rtol=1e-4)

    # bf16 compute path (recommended on all generations: v5e's MXU is bf16
    # native and the affine+ReLU math stays f32); looser tolerance.
    out_bf16 = jax.block_until_ready(
        across_forward(x, params, compute_dtype=jnp.bfloat16))
    assert out_bf16.shape == ref.shape
    assert jnp.allclose(out_bf16, ref, atol=1e-1, rtol=1e-1)

    print("KERNEL_OK")
</pallas_src>

<mosaic_0001>
module attributes {stable_mosaic.version = 11 : i64} {
  func.func @across_kernel(%arg0: i32, %arg1: i32, %arg2: memref<1x18x24x36xf32, #tpu.memory_space<vmem>>, %arg3: memref<36x128xf32, #tpu.memory_space<vmem>>, %arg4: memref<1x128xf32, #tpu.memory_space<vmem>>, %arg5: memref<1x128xf32, #tpu.memory_space<vmem>>, %arg6: memref<1152x128xf32, #tpu.memory_space<vmem>>, %arg7: memref<1x128xf32, #tpu.memory_space<vmem>>, %arg8: memref<1x128xf32, #tpu.memory_space<vmem>>, %arg9: memref<1x8x16x128xf32, #tpu.memory_space<vmem>>, %arg10: memref<10x24x128xf32, #tpu.memory_space<vmem>>) attributes {dimension_semantics = [#tpu.dimension_semantics<parallel>, #tpu.dimension_semantics<parallel>], iteration_bounds = array<i64: 2, 2>, scalar_prefetch = 0 : i64, scratch_operands = 1 : i64, tpu.core_type = #tpu.core_type<tc>, window_params = [{transform_indices = @transform_0, window_bounds = array<i64: 1, 18, 24, 36>}, {pipeline_mode = #tpu.pipeline_mode<synchronous>, transform_indices = @transform_1, window_bounds = array<i64: 36, 128>}, {pipeline_mode = #tpu.pipeline_mode<synchronous>, transform_indices = @transform_2, window_bounds = array<i64: 1, 128>}, {pipeline_mode = #tpu.pipeline_mode<synchronous>, transform_indices = @transform_3, window_bounds = array<i64: 1, 128>}, {pipeline_mode = #tpu.pipeline_mode<synchronous>, transform_indices = @transform_4, window_bounds = array<i64: 1152, 128>}, {pipeline_mode = #tpu.pipeline_mode<synchronous>, transform_indices = @transform_5, window_bounds = array<i64: 1, 128>}, {pipeline_mode = #tpu.pipeline_mode<synchronous>, transform_indices = @transform_6, window_bounds = array<i64: 1, 128>}, {transform_indices = @transform_7, window_bounds = array<i64: 1, 8, 16, 128>}]} {
    %c8_i32 = arith.constant 8 : i32
    %0 = arith.muli %arg1, %c8_i32 : i32
    %1 = tpu.assume_multiple %0, 8 : i32
    %c0 = arith.constant 0 : index
    %2 = arith.index_cast %1 : i32 to index
    %c0_0 = arith.constant 0 : index
    %c0_1 = arith.constant 0 : index
    %3 = vector.load %arg2[%c0, %2, %c0_0, %c0_1] : memref<1x18x24x36xf32, #tpu.memory_space<vmem>>, vector<1x10x24x36xf32>
    %4 = vector.shape_cast %3 : vector<1x10x24x36xf32> to vector<10x24x36xf32>
    %5 = vector.shape_cast %4 : vector<10x24x36xf32> to vector<240x36xf32>
    %c0_2 = arith.constant 0 : index
    %c0_3 = arith.constant 0 : index
    %6 = vector.load %arg3[%c0_2, %c0_3] : memref<36x128xf32, #tpu.memory_space<vmem>>, vector<36x128xf32>
    %cst = arith.constant dense<0.000000e+00> : vector<240x128xf32>
    %7 = tpu.matmul %5, %6, %cst {dimension_numbers = #tpu.dot_dimension_numbers<[1], [0], [0], [1], [0, 0, 1, 1], [], []>} : vector<240x36xf32>, vector<36x128xf32>, vector<240x128xf32> -> vector<240x128xf32>
    %c0_4 = arith.constant 0 : index
    %c0_5 = arith.constant 0 : index
    %8 = vector.load %arg4[%c0_4, %c0_5] : memref<1x128xf32, #tpu.memory_space<vmem>>, vector<1x128xf32>
    %9 = vector.shape_cast %8 : vector<1x128xf32> to vector<128xf32>
    %10 = vector.shape_cast %9 : vector<128xf32> to vector<1x128xf32>
    %11 = vector.broadcast %10 : vector<1x128xf32> to vector<240x128xf32>
    %12 = arith.mulf %7, %11 : vector<240x128xf32>
    %c0_6 = arith.constant 0 : index
    %c0_7 = arith.constant 0 : index
    %13 = vector.load %arg5[%c0_6, %c0_7] : memref<1x128xf32, #tpu.memory_space<vmem>>, vector<1x128xf32>
    %14 = vector.shape_cast %13 : vector<1x128xf32> to vector<128xf32>
    %15 = vector.shape_cast %14 : vector<128xf32> to vector<1x128xf32>
    %16 = vector.broadcast %15 : vector<1x128xf32> to vector<240x128xf32>
    %17 = arith.addf %12, %16 : vector<240x128xf32>
    %cst_8 = arith.constant 0.000000e+00 : f32
    %18 = vector.broadcast %cst_8 : f32 to vector<240x128xf32>
    %19 = arith.maximumf %17, %18 : vector<240x128xf32>
    %20 = vector.shape_cast %19 : vector<240x128xf32> to vector<10x24x128xf32>
    %c0_9 = arith.constant 0 : index
    %c0_10 = arith.constant 0 : index
    %c0_11 = arith.constant 0 : index
    %21 = vector.load %arg10[%c0_9, %c0_10, %c0_11] : memref<10x24x128xf32, #tpu.memory_space<vmem>>, vector<10x24x128xf32>
    tpu.vector_store %arg10[%c0_9, %c0_10, %c0_11], %20 {strides = array<i32>} : memref<10x24x128xf32, #tpu.memory_space<vmem>>, vector<10x24x128xf32>,
    %c0_12 = arith.constant 0 : index
    %c0_13 = arith.constant 0 : index
    %c0_14 = arith.constant 0 : index
    %22 = vector.load %arg10[%c0_12, %c0_13, %c0_14] : memref<10x24x128xf32, #tpu.memory_space<vmem>>, vector<8x16x128xf32>
    %23 = vector.shape_cast %22 : vector<8x16x128xf32> to vector<128x128xf32>
    %c0_15 = arith.constant 0 : index
    %c1 = arith.constant 1 : index
    %c0_16 = arith.constant 0 : index
    %24 = vector.load %arg10[%c0_15, %c1, %c0_16] : memref<10x24x128xf32, #tpu.memory_space<vmem>>, vector<8x16x128xf32>
    %25 = vector.shape_cast %24 : vector<8x16x128xf32> to vector<128x128xf32>
    %c0_17 = arith.constant 0 : index
    %c2 = arith.constant 2 : index
    %c0_18 = arith.constant 0 : index
    %26 = vector.load %arg10[%c0_17, %c2, %c0_18] : memref<10x24x128xf32, #tpu.memory_space<vmem>>, vector<8x16x128xf32>
    %27 = vector.shape_cast %26 : vector<8x16x128xf32> to vector<128x128xf32>
    %c1_19 = arith.constant 1 : index
    %c0_20 = arith.constant 0 : index
    %c0_21 = arith.constant 0 : index
    %28 = vector.load %arg10[%c1_19, %c0_20, %c0_21] : memref<10x24x128xf32, #tpu.memory_space<vmem>>, vector<8x16x128xf32>
    %29 = vector.shape_cast %28 : vector<8x16x128xf32> to vector<128x128xf32>
    %c1_22 = arith.constant 1 : index
    %c1_23 = arith.constant 1 : index
    %c0_24 = arith.constant 0 : index
    %30 = vector.load %arg10[%c1_22, %c1_23, %c0_24] : memref<10x24x128xf32, #tpu.memory_space<vmem>>, vector<8x16x128xf32>
    %31 = vector.shape_cast %30 : vector<8x16x128xf32> to vector<128x128xf32>
    %c1_25 = arith.constant 1 : index
    %c2_26 = arith.constant 2 : index
    %c0_27 = arith.constant 0 : index
    %32 = vector.load %arg10[%c1_25, %c2_26, %c0_27] : memref<10x24x128xf32, #tpu.memory_space<vmem>>, vector<8x16x128xf32>
    %33 = vector.shape_cast %32 : vector<8x16x128xf32> to vector<128x128xf32>
    %c2_28 = arith.constant 2 : index
    %c0_29 = arith.constant 0 : index
    %c0_30 = arith.constant 0 : index
    %34 = vector.load %arg10[%c2_28, %c0_29, %c0_30] : memref<10x24x128xf32, #tpu.memory_space<vmem>>, vector<8x16x128xf32>
    %35 = vector.shape_cast %34 : vector<8x16x128xf32> to vector<128x128xf32>
    %c2_31 = arith.constant 2 : index
    %c1_32 = arith.constant 1 : index
    %c0_33 = arith.constant 0 : index
    %36 = vector.load %arg10[%c2_31, %c1_32, %c0_33] : memref<10x24x128xf32, #tpu.memory_space<vmem>>, vector<8x16x128xf32>
    %37 = vector.shape_cast %36 : vector<8x16x128xf32> to vector<128x128xf32>
    %c2_34 = arith.constant 2 : index
    %c2_35 = arith.constant 2 : index
    %c0_36 = arith.constant 0 : index
    %38 = vector.load %arg10[%c2_34, %c2_35, %c0_36] : memref<10x24x128xf32, #tpu.memory_space<vmem>>, vector<8x16x128xf32>
    %39 = vector.shape_cast %38 : vector<8x16x128xf32> to vector<128x128xf32>
    %40 = tpu.concatenate %23, %25, %27, %29, %31, %33, %35, %37, %39 in 1 : vector<128x128xf32>, vector<128x128xf32>, vector<128x128xf32>, vector<128x128xf32>, vector<128x128xf32>, vector<128x128xf32>, vector<128x128xf32>, vector<128x128xf32>, vector<128x128xf32> -> vector<128x1152xf32>
    %c0_37 = arith.constant 0 : index
    %c0_38 = arith.constant 0 : index
    %41 = vector.load %arg6[%c0_37, %c0_38] : memref<1152x128xf32, #tpu.memory_space<vmem>>, vector<1152x128xf32>
    %cst_39 = arith.constant dense<0.000000e+00> : vector<128x128xf32>
    %42 = tpu.matmul %40, %41, %cst_39 {dimension_numbers = #tpu.dot_dimension_numbers<[1], [0], [0], [1], [0, 0, 1, 1], [], []>} : vector<128x1152xf32>, vector<1152x128xf32>, vector<128x128xf32> -> vector<128x128xf32>
    %c0_40 = arith.constant 0 : index
    %c0_41 = arith.constant 0 : index
    %43 = vector.load %arg7[%c0_40, %c0_41] : memref<1x128xf32, #tpu.memory_space<vmem>>, vector<1x128xf32>
    %44 = vector.shape_cast %43 : vector<1x128xf32> to vector<128xf32>
    %45 = vector.shape_cast %44 : vector<128xf32> to vector<1x128xf32>
    %46 = vector.broadcast %45 : vector<1x128xf32> to vector<128x128xf32>
    %47 = arith.mulf %42, %46 : vector<128x128xf32>
    %c0_42 = arith.constant 0 : index
    %c0_43 = arith.constant 0 : index
    %48 = vector.load %arg8[%c0_42, %c0_43] : memref<1x128xf32, #tpu.memory_space<vmem>>, vector<1x128xf32>
    %49 = vector.shape_cast %48 : vector<1x128xf32> to vector<128xf32>
    %50 = vector.shape_cast %49 : vector<128xf32> to vector<1x128xf32>
    %51 = vector.broadcast %50 : vector<1x128xf32> to vector<128x128xf32>
    %52 = arith.addf %47, %51 : vector<128x128xf32>
    %cst_44 = arith.constant 0.000000e+00 : f32
    %53 = vector.broadcast %cst_44 : f32 to vector<128x128xf32>
    %54 = arith.maximumf %52, %53 : vector<128x128xf32>
    %55 = vector.shape_cast %54 : vector<128x128xf32> to vector<8x16x128xf32>
    %c0_45 = arith.constant 0 : index
    %c0_46 = arith.constant 0 : index
    %c0_47 = arith.constant 0 : index
    %c0_48 = arith.constant 0 : index
    %56 = vector.load %arg9[%c0_45, %c0_46, %c0_47, %c0_48] : memref<1x8x16x128xf32, #tpu.memory_space<vmem>>, vector<1x8x16x128xf32>
    %57 = vector.shape_cast %56 : vector<1x8x16x128xf32> to vector<8x16x128xf32>
    %58 = vector.shape_cast %55 : vector<8x16x128xf32> to vector<1x8x16x128xf32>
    tpu.vector_store %arg9[%c0_45, %c0_46, %c0_47, %c0_48], %58 {strides = array<i32>} : memref<1x8x16x128xf32, #tpu.memory_space<vmem>>, vector<1x8x16x128xf32>,
    return
  }
  func.func @transform_0(%arg0: i32, %arg1: i32) -> (i32, i32, i32, i32) {
    %c0_i32 = arith.constant 0 : i32
    %c0_i32_0 = arith.constant 0 : i32
    %c0_i32_1 = arith.constant 0 : i32
    %c0_i32_2 = arith.constant 0 : i32
    return %arg0, %c0_i32, %c0_i32_0, %c0_i32_1 : i32, i32, i32, i32
  }
  func.func @transform_1(%arg0: i32, %arg1: i32) -> (i32, i32) {
    %c0_i32 = arith.constant 0 : i32
    %c0_i32_0 = arith.constant 0 : i32
    %c0_i32_1 = arith.constant 0 : i32
    return %c0_i32, %c0_i32_0 : i32, i32
  }
  func.func @transform_2(%arg0: i32, %arg1: i32) -> (i32, i32) {
    %c0_i32 = arith.constant 0 : i32
    %c0_i32_0 = arith.constant 0 : i32
    %c0_i32_1 = arith.constant 0 : i32
    return %c0_i32, %c0_i32_0 : i32, i32
  }
  func.func @transform_3(%arg0: i32, %arg1: i32) -> (i32, i32) {
    %c0_i32 = arith.constant 0 : i32
    %c0_i32_0 = arith.constant 0 : i32
    %c0_i32_1 = arith.constant 0 : i32
    return %c0_i32, %c0_i32_0 : i32, i32
  }
  func.func @transform_4(%arg0: i32, %arg1: i32) -> (i32, i32) {
    %c0_i32 = arith.constant 0 : i32
    %c0_i32_0 = arith.constant 0 : i32
    %c0_i32_1 = arith.constant 0 : i32
    return %c0_i32, %c0_i32_0 : i32, i32
  }
  func.func @transform_5(%arg0: i32, %arg1: i32) -> (i32, i32) {
    %c0_i32 = arith.constant 0 : i32
    %c0_i32_0 = arith.constant 0 : i32
    %c0_i32_1 = arith.constant 0 : i32
    return %c0_i32, %c0_i32_0 : i32, i32
  }
  func.func @transform_6(%arg0: i32, %arg1: i32) -> (i32, i32) {
    %c0_i32 = arith.constant 0 : i32
    %c0_i32_0 = arith.constant 0 : i32
    %c0_i32_1 = arith.constant 0 : i32
    return %c0_i32, %c0_i32_0 : i32, i32
  }
  func.func @transform_7(%arg0: i32, %arg1: i32) -> (i32, i32, i32, i32) {
    %c0_i32 = arith.constant 0 : i32
    %c0_i32_0 = arith.constant 0 : i32
    %c0_i32_1 = arith.constant 0 : i32
    return %arg0, %arg1, %c0_i32, %c0_i32_0 : i32, i32, i32, i32
  }
}

</mosaic_0001>

<bundles_post_ra>
// kernel: across_forward_nhwc.1
= control target key start
LH: loop header
LB: loop body
LE: loop exit
PB: predicated region body
PF: predicated region fallthrough
CT: control target
= control target key end

     0   :  { %s2639_s24 = smov 0   ;;  %s2641_s25 = smov 0   ;;  %s3784_s0 = inlined_call_operand.vmem [shape: f32[2,18,24,36], index: 0, kind: input, shape index: {}]   ;;  %s3785_s1 = inlined_call_operand.vmem [shape: f32[36,128], index: 1, kind: input, shape index: {}]   ;;  %s3786_s2 = inlined_call_operand.vmem [shape: f32[1,128], index: 2, kind: input, shape index: {}]   ;;  %s3787_s3 = inlined_call_operand.vmem [shape: f32[1,128], index: 3, kind: input, shape index: {}]   ;;  %s3788_s4 = inlined_call_operand.vmem [shape: f32[1152,128], index: 4, kind: input, shape index: {}]   ;;  %s3789_s5 = inlined_call_operand.vmem [shape: f32[1,128], index: 5, kind: input, shape index: {}]   ;;  %s3790_s6 = inlined_call_operand.vmem [shape: f32[1,128], index: 6, kind: input, shape index: {}]   ;;  %s3791_s7 = inlined_call_operand.vmem [shape: f32[2,16,16,128], index: 7, kind: output, shape index: {}]  }
   0x1   :  { %s2643_s26 = smov 0   ;;  %s2645_s27 = smov 0  }
   0x2   :  { %s2647_s28 = smov 0  }
   0x3 LB: > { %s26_s29 = sadd.s32 1, %s2589_s26  ;;  %s29_s30 = sadd.s32 1, %s2593_s27  ;;  %s2597_s28 = sphi %s2647_s28, %s17_s28   ;;  %s2593_s27 = sphi %s2645_s27, %s3831_s27   ;;  %s2589_s26 = sphi %s2643_s26, %s3830_s26   ;;  %s2585_s25 = sphi %s2641_s25, %s3829_s25   ;;  %s2581_s24 = sphi %s2639_s24, %s3828_s24  }
   0x4   : > { %p27_p0 = scmp.ge.s32.totalorder %s26_s29, 2  ;;  %p1975_p1 = scmp.ge.s32.totalorder %s2597_s28, 1 }
   0x5   : > { %p251_p2 = scmp.lt.s32.totalorder %s2597_s28, 5 }
   0x6   : > { %s3833_s29 = smov (%p27_p0, %s26_s29), 0  ;;  %s3835_s30 = smov (!%p27_p0, %s29_s30), %s2593_s27 }
   0x7   : > { %p252_p3 = pnand %p1975_p1, %p251_p2  ;;  %p31_p4 = scmp.ge.s32.totalorder %s3835_s30, 2 }
   0x9   : > { %s3837_s30 = smov (%p31_p4, %s3835_s30), 0  ;;  %255 = sbr.rel (%p252_p3) target bundleno = 596 (0x254), region = 48 }
   0xe   : > { %v341_v0 = vld [vmem:[%s3785_s1 + $0x20] sm:$0xf]  ;;  %vm433_vm0 = vcmask 1043456   ;;  %v340_v1 = vld [vmem:[%s3785_s1 + $0x18] sm:$0xff]  ;;  %p288_p5 = scmp.lt.s32.totalorder %s2585_s25, 1  ;;  %v339_v3 = vld [vmem:[%s3785_s1 + $0x10] sm:$0xff] }
   0xf   : > { %2407 = vmatprep.subr.msk.mxu0 %vm433_vm0, %v341_v0  ;;  %v963_v2 = vld [vmem:[%s3788_s4 + $0xf8] sm:$0xff]  ;;  %s1982_s18 = smul.u32 192, %s2581_s24  ;;  %v962_v5 = vld [vmem:[%s3788_s4 + $0xf0] sm:$0xff]  ;;  %v961_v7 = vld [vmem:[%s3788_s4 + $0xe8] sm:$0xff]  ;;  %vm342_vm1 = vcmask 293888   ;;  %s1977_s14 = sshll.u32 %s2581_s24, 3 }
  0x10   : > { %2408 = vmatpush3.msk.msra.mxu0 %vm433_vm0, %v341_v0  ;;  %s3839_s25 = smov (!%p288_p5, %s2585_s25), 1  ;;  %2055 = vmatprep.subr.mxu1 %v963_v2  ;;  %v947_v4 = vld [vmem:[%s3788_s4 + $0x78] sm:$0xff]  ;;  %v946_v6 = vld [vmem:[%s3788_s4 + $0x70] sm:$0xff]  ;;  %v338_v8 = vld [vmem:[%s3785_s1 + $0x8] sm:$0xff]  ;;  %p296_p6 = scmp.lt.s32.totalorder %s1977_s14, 15 }
  0x11   : > { %2409 = vmatprep.subr.mxu0 %v340_v1  ;;  %2056 = vmatpush3.msra.mxu1 %v947_v4  ;;  %s2518_s11 = smul.u32 432, %s3839_s25  ;;  %v945_v9 = vld [vmem:[%s3788_s4 + $0x68] sm:$0xff]  ;;  %v960_v10 = vld [vmem:[%s3788_s4 + $0xe0] sm:$0xff]  ;;  %v995_v15 = vld [vmem:[%s3788_s4 + $0x1f8] sm:$0xff]  ;;  %s1979_s15 = sshll.u32 %s3839_s25, 5 }
  0x12   : > { %2410 = vmatpush3.msra.mxu0 %v340_v1  ;;  %2057 = vmatprep.subr.mxu1 %v962_v5  ;;  %v337_v11 = vld [vmem:[%s3785_s1] sm:$0xff]  ;;  %v979_v17 = vld [vmem:[%s3788_s4 + $0x178] sm:$0xff]  ;;  %v994_v18 = vld [vmem:[%s3788_s4 + $0x1f0] sm:$0xff]  ;;  %s3841_s14 = smov (!%p296_p6, %s1977_s14), 15 }
  0x13   : > { %2411 = vmatprep.subr.mxu0 %v339_v3  ;;  %2058 = vmatpush3.msra.mxu1 %v946_v6  ;;  %s292_s21 = scalar_lea.vmem %s3784_s0, %s2518_s11  ;;  %v944_v12 = vld [vmem:[%s3788_s4 + $0x60] sm:$0xff]  ;;  %v959_v19 = vld [vmem:[%s3788_s4 + $0xd8] sm:$0xff]  ;;  %v978_v20 = vld [vmem:[%s3788_s4 + $0x170] sm:$0xff]  ;;  %s1978_s24 = sshll.u32 %s3841_s14, 1 }
  0x14   : > { %2412 = vmatpush3.msra.mxu0 %v339_v3  ;;  %2059 = vmatprep.subr.mxu1 %v961_v7  ;;  %s2714_s22 = scalar_lea.vmem %s292_s21, %s1982_s18  ;;  %v943_v21 = vld [vmem:[%s3788_s4 + $0x58] sm:$0xff]  ;;  %v993_v23 = vld [vmem:[%s3788_s4 + $0x1e8] sm:$0xff]  ;;  %v992_v26 = vld [vmem:[%s3788_s4 + $0x1e0] sm:$0xff]  ;;  %s3635_s16 = sadd.s32 %s1979_s15, %s1978_s24 }
  0x15   : > { %2413 = vmatprep.subr.mxu0 %v338_v8  ;;  %2060 = vmatpush3.msra.mxu1 %v945_v9  ;;  %v307_v13 = vld [vmem:[%s2714_s22] sm:$0xff]  ;;  %v308_v14 = vld [vmem:[%s2714_s22 + $0x8] sm:$0xff]  ;;  %v309_v16 = vld [vmem:[%s2714_s22 + $0x10] sm:$0xff]  ;;  %s1980_s21 = sshll.u32 %s3635_s16, 3 }
  0x16   : > { %2414 = vmatpush3.msra.mxu0 %v338_v8  ;;  %2061 = vmatprep.subr.mxu1 %v960_v10  ;;  %v310_v22 = vld [vmem:[%s2714_s22 + $0x18] sm:$0xff]  ;;  %v311_v24 = vld [vmem:[%s2714_s22 + $0x20] sm:$0xff]  ;;  %v977_v25 = vld [vmem:[%s3788_s4 + $0x168] sm:$0xff]  ;;  %s3677_s9 = scalar_lea.vmem %s3791_s7, %s1980_s21 }
  0x17   : > { %2415 = vmatprep.subr.mxu0 %v337_v11  ;;  %2417 = vmatprep.mubr.msk.f32.mxu0 %vm342_vm1, %v307_v13  ;;  %v958_v27 = vld [vmem:[%s3788_s4 + $0xd0] sm:$0xff]  ;;  %v976_v28 = vld [vmem:[%s3788_s4 + $0x160] sm:$0xff]  ;;  %v312_v29 = vld [vmem:[%s2714_s22 + $0x28] sm:$0xff] }
  0x18   : > { %2416 = vmatpush3.msra.mxu0 %v337_v11  ;;  %2062 = vmatpush3.msra.mxu1 %v944_v12  ;;  %v313_v30 = vld [vmem:[%s2714_s22 + $0x30] sm:$0xff]  ;;  %v991_v32 = vld [vmem:[%s3788_s4 + $0x1d8] sm:$0xff]  ;;  %v957_v33 = vld [vmem:[%s3788_s4 + $0xc8] sm:$0xff] }
  0x19   : > { %2418 = vmatmul.mubr.msk.f32.vlgmr.msra.gmra.mxu0 %vm342_vm1, %v308_v14  ;;  %2135 = vmatprep.subr.mxu0 %v995_v15  ;;  %v942_v31 = vld [vmem:[%s3788_s4 + $0x50] sm:$0xff]  ;;  %v975_v34 = vld [vmem:[%s3788_s4 + $0x158] sm:$0xff]  ;;  %v941_v35 = vld [vmem:[%s3788_s4 + $0x48] sm:$0xff] }
  0x1a   : > { %2420 = vmatprep.mubr.msk.f32.mxu0 %vm342_vm1, %v309_v16  ;;  %2136 = vmatpush3.msra.mxu0 %v979_v17  ;;  %v990_v36 = vld [vmem:[%s3788_s4 + $0x1d0] sm:$0xff]  ;;  %v314_v37 = vld [vmem:[%s2714_s22 + $0x38] sm:$0xff]  ;;  %v956_v38 = vld [vmem:[%s3788_s4 + $0xc0] sm:$0xff] }
  0x1b   : > { %2137 = vmatprep.subr.mxu0 %v994_v18  ;;  %2063 = vmatprep.subr.mxu1 %v959_v19  ;;  %v315_v39 = vld [vmem:[%s2714_s22 + $0x40] sm:$0xff]  ;;  %v974_v40 = vld [vmem:[%s3788_s4 + $0x150] sm:$0xff]  ;;  %v316_v41 = vld [vmem:[%s2714_s22 + $0x48] sm:$0xff] }
  0x1c   : > { %2138 = vmatpush3.msra.mxu0 %v978_v20  ;;  %2064 = vmatpush3.msra.mxu1 %v943_v21  ;;  %v317_v42 = vld [vmem:[%s2714_s22 + $0x50] sm:$0xff]  ;;  %v318_v43 = vld [vmem:[%s2714_s22 + $0x58] sm:$0xff]  ;;  %v319_v44 = vld [vmem:[%s2714_s22 + $0x60] sm:$0xff] }
  0x1d   : > { %2421 = vmatmul.mubr.msk.f32.gmra.mxu0 %vm342_vm1, %v310_v22  ;;  %2139 = vmatprep.subr.mxu0 %v993_v23  ;;  %v320_v45 = vld [vmem:[%s2714_s22 + $0x68] sm:$0xff]  ;;  %v321_v46 = vld [vmem:[%s2714_s22 + $0x70] sm:$0xff]  ;;  %v322_v47 = vld [vmem:[%s2714_s22 + $0x78] sm:$0xff] }
  0x1e   : > { %2423 = vmatprep.mubr.msk.f32.mxu0 %vm342_vm1, %v311_v24  ;;  %2140 = vmatpush3.msra.mxu0 %v977_v25  ;;  %v323_v48 = vld [vmem:[%s2714_s22 + $0x80] sm:$0xff]  ;;  %v324_v49 = vld [vmem:[%s2714_s22 + $0x88] sm:$0xff]  ;;  %v325_v50 = vld [vmem:[%s2714_s22 + $0x90] sm:$0xff] }
  0x1f   : > { %2141 = vmatprep.subr.mxu0 %v992_v26  ;;  %2065 = vmatprep.subr.mxu1 %v958_v27  ;;  %v326_v51 = vld [vmem:[%s2714_s22 + $0x98] sm:$0xff]  ;;  %v327_v52 = vld [vmem:[%s2714_s22 + $0xa0] sm:$0xff]  ;;  %v328_v53 = vld [vmem:[%s2714_s22 + $0xa8] sm:$0xff] }
  0x20   : > { %2142 = vmatpush3.msra.mxu0 %v976_v28  ;;  %2066 = vmatpush3.msra.mxu1 %v942_v31  ;;  %v329_v54 = vld [vmem:[%s2714_s22 + $0xb0] sm:$0xff]  ;;  %v330_v55 = vld [vmem:[%s2714_s22 + $0xb8] sm:$0xff]  ;;  %v331_v56 = vld [vmem:[%s2714_s22 + $0xc0] sm:$0xff] }
  0x21   : > { %2424 = vmatmul.mubr.msk.f32.gmra.mxu0 %vm342_vm1, %v312_v29  ;;  %2143 = vmatprep.subr.mxu0 %v991_v32  ;;  %v332_v57 = vld [vmem:[%s2714_s22 + $0xc8] sm:$0xff]  ;;  %v333_v58 = vld [vmem:[%s2714_s22 + $0xd0] sm:$0xff]  ;;  %v334_v59 = vld [vmem:[%s2714_s22 + $0xd8] sm:$0xff] }
  0x22   : > { %2426 = vmatprep.mubr.msk.f32.mxu0 %vm342_vm1, %v313_v30  ;;  %2067 = vmatprep.subr.mxu1 %v957_v33  ;;  %v335_v60 = vld [vmem:[%s2714_s22 + $0xe0] sm:$0xff]  ;;  %v336_v61 = vld [vmem:[%s2714_s22 + $0xe8] sm:$0xff]  ;;  %v987_v3 = vld [vmem:[%s3788_s4 + $0x1b8] sm:$0xff] }
  0x23   : > { %2144 = vmatpush3.msra.mxu0 %v975_v34  ;;  %2068 = vmatpush3.msra.mxu1 %v941_v35  ;;  %v989_v62 = vld [vmem:[%s3788_s4 + $0x1c8] sm:$0xff]  ;;  %v988_v0 = vld [vmem:[%s3788_s4 + $0x1c0] sm:$0xff]  ;;  %v955_v4 = vld [vmem:[%s3788_s4 + $0xb8] sm:$0xff] }
  0x24   : > { %2145 = vmatprep.subr.mxu0 %v990_v36  ;;  %2069 = vmatprep.subr.mxu1 %v956_v38  ;;  %v973_v63 = vld [vmem:[%s3788_s4 + $0x148] sm:$0xff]  ;;  %v972_v1 = vld [vmem:[%s3788_s4 + $0x140] sm:$0xff]  ;;  %v971_v5 = vld [vmem:[%s3788_s4 + $0x138] sm:$0xff] }
  0x25   : > { %2427 = vmatmul.mubr.msk.f32.gmra.mxu0 %vm342_vm1, %v314_v37  ;;  %v940_v2 = vld [vmem:[%s3788_s4 + $0x40] sm:$0xff]  ;;  %v939_v6 = vld [vmem:[%s3788_s4 + $0x38] sm:$0xff]  ;;  %v986_v7 = vld [vmem:[%s3788_s4 + $0x1b0] sm:$0xff] }
  0x26   : > { %2429 = vmatprep.mubr.msk.f32.mxu0 %vm342_vm1, %v315_v39  ;;  %2146 = vmatpush3.msra.mxu0 %v974_v40  ;;  %v954_v8 = vld [vmem:[%s3788_s4 + $0xb0] sm:$0xff]  ;;  %v985_v11 = vld [vmem:[%s3788_s4 + $0x1a8] sm:$0xff]  ;;  %v984_v15 = vld [vmem:[%s3788_s4 + $0x1a0] sm:$0xff] }
  0x27   : > { %2147 = vmatprep.subr.mxu0 %v989_v62  ;;  %2070 = vmatpush3.msra.mxu1 %v940_v2  ;;  %v970_v9 = vld [vmem:[%s3788_s4 + $0x130] sm:$0xff]  ;;  %v953_v12 = vld [vmem:[%s3788_s4 + $0xa8] sm:$0xff]  ;;  %v952_v16 = vld [vmem:[%s3788_s4 + $0xa0] sm:$0xff] }
  0x28   : > { %2148 = vmatpush3.msra.mxu0 %v973_v63  ;;  %2071 = vmatprep.subr.mxu1 %v955_v4  ;;  %v938_v10 = vld [vmem:[%s3788_s4 + $0x30] sm:$0xff]  ;;  %v969_v13 = vld [vmem:[%s3788_s4 + $0x128] sm:$0xff]  ;;  %v968_v17 = vld [vmem:[%s3788_s4 + $0x120] sm:$0xff] }
  0x29   : > { %2430 = vmatmul.mubr.msk.f32.gmra.mxu0 %vm342_vm1, %v316_v41  ;;  %2149 = vmatprep.subr.mxu0 %v988_v0  ;;  %v937_v14 = vld [vmem:[%s3788_s4 + $0x28] sm:$0xff]  ;;  %v936_v18 = vld [vmem:[%s3788_s4 + $0x20] sm:$0xff]  ;;  %v983_v19 = vld [vmem:[%s3788_s4 + $0x198] sm:$0xff] }
  0x2a   : > { %2432 = vmatprep.mubr.msk.f32.mxu0 %vm342_vm1, %v317_v42  ;;  %2150 = vmatpush3.msra.mxu0 %v972_v1  ;;  %v951_v20 = vld [vmem:[%s3788_s4 + $0x98] sm:$0xff]  ;;  %v982_v23 = vld [vmem:[%s3788_s4 + $0x190] sm:$0xff]  ;;  %v981_v27 = vld [vmem:[%s3788_s4 + $0x188] sm:$0xff] }
  0x2b   : > { %2151 = vmatprep.subr.mxu0 %v987_v3  ;;  %2072 = vmatpush3.msra.mxu1 %v939_v6  ;;  %v967_v21 = vld [vmem:[%s3788_s4 + $0x118] sm:$0xff]  ;;  %v950_v24 = vld [vmem:[%s3788_s4 + $0x90] sm:$0xff]  ;;  %v949_v28 = vld [vmem:[%s3788_s4 + $0x88] sm:$0xff] }
  0x2c   : > { %2152 = vmatpush3.msra.mxu0 %v971_v5  ;;  %2073 = vmatprep.subr.mxu1 %v954_v8  ;;  %v935_v22 = vld [vmem:[%s3788_s4 + $0x18] sm:$0xff]  ;;  %v966_v25 = vld [vmem:[%s3788_s4 + $0x110] sm:$0xff]  ;;  %v965_v29 = vld [vmem:[%s3788_s4 + $0x108] sm:$0xff] }
  0x2d   : > { %2433 = vmatmul.mubr.msk.f32.gmra.mxu0 %vm342_vm1, %v318_v43  ;;  %2153 = vmatprep.subr.mxu0 %v986_v7  ;;  %v934_v26 = vld [vmem:[%s3788_s4 + $0x10] sm:$0xff]  ;;  %v933_v30 = vld [vmem:[%s3788_s4 + $0x8] sm:$0xff]  ;;  %v980_v31 = vld [vmem:[%s3788_s4 + $0x180] sm:$0xff] }
  0x2e   : > { %2435 = vmatprep.mubr.msk.f32.mxu0 %vm342_vm1, %v319_v44  ;;  %2154 = vmatpush3.msra.mxu0 %v970_v9  ;;  %v948_v32 = vld [vmem:[%s3788_s4 + $0x80] sm:$0xff]  ;;  %v1027_v35 = vld [vmem:[%s3788_s4 + $0x2f8] sm:$0xff] }
  0x2f   : > { %2074 = vmatpush3.msra.mxu1 %v938_v10  ;;  %2155 = vmatprep.subr.mxu0 %v985_v11  ;;  %v964_v33 = vld [vmem:[%s3788_s4 + $0x100] sm:$0xff]  ;;  %v1059_v36 = vld [vmem:[%s3788_s4 + $0x3f8] sm:$0xff] }
  0x30   : > { %2075 = vmatprep.subr.mxu1 %v953_v12  ;;  %2156 = vmatpush3.msra.mxu0 %v969_v13  ;;  %v932_v34 = vld [vmem:[%s3788_s4] sm:$0xff]  ;;  %v1011_v4 = vld [vmem:[%s3788_s4 + $0x278] sm:$0xff]  ;;  %v1026_v12 = vld [vmem:[%s3788_s4 + $0x2f0] sm:$0xff] }
  0x31   : > { %2436 = vmatmul.mubr.msk.f32.gmra.mxu0 %vm342_vm1, %v320_v45  ;;  %2076 = vmatpush3.msra.mxu1 %v937_v14  ;;  %v2956_v37 = vld [vmem:[%s3786_s2] ss:$0 sm:$0xff]  ;;  %v1043_v8 = vld [vmem:[%s3788_s4 + $0x378] sm:$0xff]  ;;  %v1058_v13 = vld [vmem:[%s3788_s4 + $0x3f0] sm:$0xff] }
  0x32   : > { %2438 = vmatprep.mubr.msk.f32.mxu0 %vm342_vm1, %v321_v46  ;;  %2157 = vmatprep.subr.mxu0 %v984_v15  ;;  %v2961_v39 = vld [vmem:[%s3787_s3] ss:$0 sm:$0xff]  ;;  %v1010_v15 = vld [vmem:[%s3788_s4 + $0x270] sm:$0xff] }
  0x33   : > { %2077 = vmatprep.subr.mxu1 %v952_v16  ;;  %2158 = vmatpush3.msra.mxu0 %v968_v17 }
  0x34   : > { %2078 = vmatpush3.msra.mxu1 %v936_v18  ;;  %2159 = vmatprep.subr.mxu0 %v983_v19  ;;  %v1025_v19 = vld [vmem:[%s3788_s4 + $0x2e8] sm:$0xff] }
  0x35   : > { %2439 = vmatmul.mubr.msk.f32.gmra.mxu0 %vm342_vm1, %v322_v47  ;;  %2079 = vmatprep.subr.mxu1 %v951_v20 }
  0x36   : > { %2441 = vmatprep.mubr.msk.f32.mxu0 %vm342_vm1, %v323_v48  ;;  %2160 = vmatpush3.msra.mxu0 %v967_v21 }
  0x37   : > { %2080 = vmatpush3.msra.mxu1 %v935_v22  ;;  %2161 = vmatprep.subr.mxu0 %v982_v23  ;;  %v1009_v23 = vld [vmem:[%s3788_s4 + $0x268] sm:$0xff] }
  0x38   : > { %2081 = vmatprep.subr.mxu1 %v950_v24  ;;  %2162 = vmatpush3.msra.mxu0 %v966_v25 }
  0x39   : > { %2442 = vmatmul.mubr.msk.f32.gmra.mxu0 %vm342_vm1, %v324_v49  ;;  %2082 = vmatpush3.msra.mxu1 %v934_v26 }
  0x3a   : > { %2444 = vmatprep.mubr.msk.f32.mxu0 %vm342_vm1, %v325_v50  ;;  %2163 = vmatprep.subr.mxu0 %v981_v27  ;;  %v1024_v27 = vld [vmem:[%s3788_s4 + $0x2e0] sm:$0xff] }
  0x3b   : > { %2083 = vmatprep.subr.mxu1 %v949_v28  ;;  %2164 = vmatpush3.msra.mxu0 %v965_v29  ;;  %v1008_v29 = vld [vmem:[%s3788_s4 + $0x260] sm:$0xff] }
  0x3c   : > { %2084 = vmatpush3.msra.mxu1 %v933_v30  ;;  %2165 = vmatprep.subr.mxu0 %v980_v31 }
  0x3d   : > { %2445 = vmatmul.mubr.msk.f32.gmra.mxu0 %vm342_vm1, %v326_v51  ;;  %2085 = vmatprep.subr.mxu1 %v948_v32 }
  0x3e   : > { %2447 = vmatprep.mubr.msk.f32.mxu0 %vm342_vm1, %v327_v52  ;;  %2166 = vmatpush3.msra.mxu0 %v964_v33  ;;  %v1023_v33 = vld [vmem:[%s3788_s4 + $0x2d8] sm:$0xff] }
  0x3f   : > { %2086 = vmatpush3.msra.mxu1 %v932_v34  ;;  %2295 = vmatprep.subr.mxu0 %v1059_v36 }
  0x40   : > { %2215 = vmatprep.subr.mxu1 %v1027_v35 }
  0x41   : > { %2448 = vmatmul.mubr.msk.f32.gmra.mxu0 %vm342_vm1, %v328_v53 }
  0x42   : > { %2450 = vmatprep.mubr.msk.f32.mxu0 %vm342_vm1, %v329_v54 }
  0x45   : > { %2451 = vmatmul.mubr.msk.f32.gmra.mxu0 %vm342_vm1, %v330_v55 }
  0x46   : > { %2453 = vmatprep.mubr.msk.f32.mxu0 %vm342_vm1, %v331_v56 }
  0x49   : > { %2454 = vmatmul.mubr.msk.f32.gmra.mxu0 %vm342_vm1, %v332_v57 }
  0x4a   : > { %2456 = vmatprep.mubr.msk.f32.mxu0 %vm342_vm1, %v333_v58 }
  0x4d   : > { %2457 = vmatmul.mubr.msk.f32.gmra.mxu0 %vm342_vm1, %v334_v59 }
  0x4e   : > { %2459 = vmatprep.mubr.msk.f32.mxu0 %vm342_vm1, %v335_v60 }
  0x51   : > { %2460 = vmatmul.mubr.msk.f32.gmra.mxu0 %vm342_vm1, %v336_v61 }
  0xd9   : > { %v2419_v38 = vpop.f32.mrf.mxu0 }
  0xda   : > { %v660_v40 = vmul.f32 %v2419_v38, %v2956_v37 }
  0xdb   : > { %v503_v41 = vpop.f32.mrf.mxu0 }
  0xdc   : > { %v2965_v42 = vadd.f32 %v2961_v39, %v660_v40  ;;  %v659_v43 = vmul.f32 %v2956_v37, %v503_v41 }
  0xdd   : > { %v2422_v44 = vpop.f32.mrf.mxu0 }
  0xde   : > { %v727_v45 = vmax.f32 %v2965_v42, 0.0  ;;  %v696_v46 = vadd.f32 %v2961_v39, %v659_v43  ;;  %v662_v47 = vmul.f32 %v2422_v44, %v2956_v37  ;;  %v1007_v42 = vld [vmem:[%s3788_s4 + $0x258] sm:$0xff] }
  0xdf   : > { %v513_v48 = vpop.f32.mrf.mxu0 }
  0xe0   : > { %757 = vst [vmem:[#allocation2 + $0x8] sm:$0xff] %v727_v45  ;;  %v726_v49 = vmax.f32 %v696_v46, 0.0  ;;  %v699_v50 = vadd.f32 %v2961_v39, %v662_v47  ;;  %v661_v51 = vmul.f32 %v2956_v37, %v513_v48  ;;  %v1042_v46 = vld [vmem:[%s3788_s4 + $0x370] sm:$0xff] }
  0xe1   : > { %v2425_v52 = vpop.f32.mrf.mxu0 }
  0xe2   : > { %756 = vst [vmem:[#allocation2] sm:$0xff] %v726_v49  ;;  %v2975_v53 = vmax.f32 %v699_v50, 0.0  ;;  %v698_v54 = vadd.f32 %v2961_v39, %v661_v51  ;;  %v664_v55 = vmul.f32 %v2425_v52, %v2956_v37  ;;  %v1057_v50 = vld [vmem:[%s3788_s4 + $0x3e8] sm:$0xff] }
  0xe3   : > { %v523_v56 = vpop.f32.mrf.mxu0 }
  0xe4   : > { %759 = vst [vmem:[#allocation2 + $0x18] sm:$0xff] %v2975_v53  ;;  %v728_v57 = vmax.f32 %v698_v54, 0.0  ;;  %v701_v58 = vadd.f32 %v2961_v39, %v664_v55  ;;  %v663_v59 = vmul.f32 %v2956_v37, %v523_v56  ;;  %1285 = vmatprep.mubr.f32.mxu0 %v2975_v53  ;;  %v1006_v56 = vld [vmem:[%s3788_s4 + $0x250] sm:$0xff] }
  0xe5   : > { %v2428_v60 = vpop.f32.mrf.mxu0 }
  0xe6   : > { %758 = vst [vmem:[#allocation2 + $0x10] sm:$0xff] %v728_v57  ;;  %v731_v61 = vmax.f32 %v701_v58, 0.0  ;;  %v700_v62 = vadd.f32 %v2961_v39, %v663_v59  ;;  %v666_v63 = vmul.f32 %v2428_v60, %v2956_v37  ;;  %v1021_v59 = vld [vmem:[%s3788_s4 + $0x2c8] sm:$0xff] }
  0xe7   : > { %v533_v0 = vpop.f32.mrf.mxu0  ;;  %v1041_v60 = vld [vmem:[%s3788_s4 + $0x368] sm:$0xff] }
  0xe8   : > { %761 = vst [vmem:[#allocation2 + $0x28] sm:$0xff] %v731_v61  ;;  %v2985_v1 = vmax.f32 %v700_v62, 0.0  ;;  %v703_v2 = vadd.f32 %v2961_v39, %v666_v63  ;;  %v665_v3 = vmul.f32 %v2956_v37, %v533_v0  ;;  %v1056_v0 = vld [vmem:[%s3788_s4 + $0x3e0] sm:$0xff] }
  0xe9   : > { %v2431_v5 = vpop.f32.mrf.mxu0  ;;  %v802_v6 = vld [vmem:[#allocation2 + $0x1] sm:$0xff] }
  0xea   : > { %v818_v7 = vld [vmem:[#allocation2 + $0x2] sm:$0xff]  ;;  %760 = vst [vmem:[#allocation2 + $0x20] sm:$0xff] %v2985_v1  ;;  %v2996_v9 = vmax.f32 %v703_v2, 0.0  ;;  %v702_v10 = vadd.f32 %v2961_v39, %v665_v3  ;;  %v668_v11 = vmul.f32 %v2431_v5, %v2956_v37  ;;  %1140 = vmatprep.mubr.f32.mxu1 %v802_v6 }
  0xeb   : > { %1286 = vmatmul.mubr.f32.vlgmr.msra.gmra.mxu0 %v818_v7  ;;  %v543_v14 = vpop.f32.mrf.mxu0  ;;  %1141 = vmatmul.mubr.f32.vlgmr.msra.gmra.mxu1 %v726_v49  ;;  %v1005_v5 = vld [vmem:[%s3788_s4 + $0x248] sm:$0xff]  ;;  %v1020_v6 = vld [vmem:[%s3788_s4 + $0x2c0] sm:$0xff] }
  0xec   : > { %1290 = vmatprep.mubr.f32.mxu0 %v2985_v1  ;;  %763 = vst [vmem:[#allocation2 + $0x38] sm:$0xff] %v2996_v9  ;;  %v3011_v16 = vmax.f32 %v702_v10, 0.0  ;;  %v705_v17 = vadd.f32 %v2961_v39, %v668_v11  ;;  %v667_v18 = vmul.f32 %v2956_v37, %v543_v14  ;;  %2216 = vmatpush3.msra.mxu1 %v1011_v4  ;;  %v1040_v11 = vld [vmem:[%s3788_s4 + $0x360] sm:$0xff] }
  0xed   : > { %2296 = vmatpush3.msra.mxu0 %v1043_v8  ;;  %v2434_v20 = vpop.f32.mrf.mxu0  ;;  %v803_v21 = vld [vmem:[#allocation2 + $0x9] sm:$0xff]  ;;  %2217 = vmatprep.subr.mxu1 %v1026_v12 }
  0xee   : > { %v819_v22 = vld [vmem:[#allocation2 + $0xa] sm:$0xff]  ;;  %2297 = vmatprep.subr.mxu0 %v1058_v13  ;;  %762 = vst [vmem:[#allocation2 + $0x30] sm:$0xff] %v3011_v16  ;;  %v3022_v24 = vmax.f32 %v705_v17, 0.0  ;;  %v704_v25 = vadd.f32 %v2961_v39, %v667_v18  ;;  %v670_v26 = vmul.f32 %v2434_v20, %v2956_v37  ;;  %1145 = vmatprep.mubr.f32.mxu1 %v803_v21  ;;  %v1004_v21 = vld [vmem:[%s3788_s4 + $0x240] sm:$0xff] }
  0xef   : > { %2218 = vmatpush3.msra.mxu1 %v1010_v15  ;;  %v553_v28 = vpop.f32.mrf.mxu0  ;;  %1291 = vmatmul.mubr.f32.gmra.mxu0 %v819_v22  ;;  %v1055_v15 = vld [vmem:[%s3788_s4 + $0x3d8] sm:$0xff] }
  0xf0   : > { %1146 = vmatmul.mubr.f32.gmra.mxu1 %v727_v45  ;;  %2219 = vmatprep.subr.mxu1 %v1025_v19  ;;  %765 = vst [vmem:[#allocation2 + $0x48] sm:$0xff] %v3022_v24  ;;  %v734_v30 = vmax.f32 %v704_v25, 0.0  ;;  %v707_v31 = vadd.f32 %v2961_v39, %v670_v26  ;;  %v669_v32 = vmul.f32 %v2956_v37, %v553_v28  ;;  %v1022_v45 = vld [vmem:[%s3788_s4 + $0x2d0] sm:$0xff]  ;;  %v1019_v22 = vld [vmem:[%s3788_s4 + $0x2b8] sm:$0xff] }
  0xf1   : > { %2220 = vmatpush3.msra.mxu1 %v1009_v23  ;;  %v3040_v34 = vld [vmem:[#allocation2 + $0x19] sm:$0xff]  ;;  %v2437_v35 = vpop.f32.mrf.mxu0  ;;  %1295 = vmatprep.mubr.f32.mxu0 %v3011_v16  ;;  %v3052_v43 = vld [vmem:[#allocation2 + $0x21] sm:$0xff] }
  0xf2   : > { %2221 = vmatprep.subr.mxu1 %v1024_v27  ;;  %v3043_v36 = vld [vmem:[#allocation2 + $0x1a] sm:$0xff]  ;;  %764 = vst [vmem:[#allocation2 + $0x40] sm:$0xff] %v734_v30  ;;  %v737_v38 = vmax.f32 %v707_v31, 0.0  ;;  %v706_v40 = vadd.f32 %v2961_v39, %v669_v32  ;;  %1150 = vmatprep.mubr.f32.mxu1 %v3040_v34  ;;  %v672_v41 = vmul.f32 %v2437_v35, %v2956_v37  ;;  %v3081_v58 = vld [vmem:[#allocation2 + $0x22] sm:$0xff]  ;;  %v1054_v31 = vld [vmem:[%s3788_s4 + $0x3d0] sm:$0xff] }
  0xf3   : > { %2222 = vmatpush3.msra.mxu1 %v1008_v29  ;;  %v563_v44 = vpop.f32.mrf.mxu0  ;;  %1296 = vmatmul.mubr.f32.gmra.mxu0 %v3043_v36  ;;  %v1039_v27 = vld [vmem:[%s3788_s4 + $0x358] sm:$0xff] }
  0xf4   : > { %1151 = vmatmul.mubr.f32.gmra.mxu1 %v2975_v53  ;;  %2223 = vmatprep.subr.mxu1 %v1023_v33  ;;  %767 = vst [vmem:[#allocation2 + $0x58] sm:$0xff] %v737_v38  ;;  %v3060_v47 = vmax.f32 %v706_v40, 0.0  ;;  %v709_v48 = vadd.f32 %v2961_v39, %v672_v41  ;;  %v671_v49 = vmul.f32 %v2956_v37, %v563_v44  ;;  %v1003_v40 = vld [vmem:[%s3788_s4 + $0x238] sm:$0xff]  ;;  %v1018_v41 = vld [vmem:[%s3788_s4 + $0x2b0] sm:$0xff] }
  0xf5   : > { %1155 = vmatprep.mubr.f32.mxu1 %v3052_v43  ;;  %v2440_v51 = vpop.f32.mrf.mxu0  ;;  %v3069_v52 = vld [vmem:[#allocation2 + $0x31] sm:$0xff]  ;;  %1300 = vmatprep.mubr.f32.mxu0 %v2996_v9 }
  0xf6   : > { %2224 = vmatpush3.msra.mxu1 %v1007_v42  ;;  %766 = vst [vmem:[#allocation2 + $0x50] sm:$0xff] %v3060_v47  ;;  %v3073_v53 = vmax.f32 %v709_v48, 0.0  ;;  %v708_v54 = vadd.f32 %v2961_v39, %v671_v49  ;;  %v674_v55 = vmul.f32 %v2440_v51, %v2956_v37  ;;  %2298 = vmatpush3.msra.mxu0 %v1042_v46  ;;  %v3114_v10 = vld [vmem:[#allocation2 + $0x32] sm:$0xff]  ;;  %v1053_v51 = vld [vmem:[%s3788_s4 + $0x3c8] sm:$0xff] }
  0xf7   : > { %2225 = vmatprep.subr.mxu1 %v1022_v45  ;;  %v573_v57 = vpop.f32.mrf.mxu0  ;;  %2299 = vmatprep.subr.mxu0 %v1057_v50  ;;  %v1038_v46 = vld [vmem:[%s3788_s4 + $0x350] sm:$0xff] }
  0xf8   : > { %1156 = vmatmul.mubr.f32.gmra.mxu1 %v2985_v1  ;;  %769 = vst [vmem:[#allocation2 + $0x68] sm:$0xff] %v3073_v53  ;;  %v3090_v61 = vmax.f32 %v708_v54, 0.0  ;;  %v711_v62 = vadd.f32 %v2961_v39, %v674_v55  ;;  %v673_v63 = vmul.f32 %v2956_v37, %v573_v57  ;;  %1301 = vmatmul.mubr.f32.gmra.mxu0 %v3081_v58 }
  0xf9   : > { %1160 = vmatprep.mubr.f32.mxu1 %v3069_v52  ;;  %v2443_v1 = vpop.f32.mrf.mxu0  ;;  %1305 = vmatprep.mubr.f32.mxu0 %v3022_v24  ;;  %v3112_v7 = vld [vmem:[#allocation2 + $0x39] sm:$0xff] }
  0xfa   : > { %2226 = vmatpush3.msra.mxu1 %v1006_v56  ;;  %768 = vst [vmem:[#allocation2 + $0x60] sm:$0xff] %v3090_v61  ;;  %v3101_v2 = vmax.f32 %v711_v62, 0.0  ;;  %v710_v3 = vadd.f32 %v2961_v39, %v673_v63  ;;  %v676_v4 = vmul.f32 %v2443_v1, %v2956_v37  ;;  %2300 = vmatpush3.msra.mxu0 %v1041_v60  ;;  %v3139_v25 = vld [vmem:[#allocation2 + $0x3a] sm:$0xff]  ;;  %v1002_v60 = vld [vmem:[%s3788_s4 + $0x230] sm:$0xff]  ;;  %v1037_v1 = vld [vmem:[%s3788_s4 + $0x348] sm:$0xff] }
  0xfb   : > { %2227 = vmatprep.subr.mxu1 %v1021_v59  ;;  %v583_v8 = vpop.f32.mrf.mxu0  ;;  %2301 = vmatprep.subr.mxu0 %v1056_v0  ;;  %v1017_v0 = vld [vmem:[%s3788_s4 + $0x2a8] sm:$0xff] }
  0xfc   : > { %1161 = vmatmul.mubr.f32.gmra.mxu1 %v3011_v16  ;;  %771 = vst [vmem:[#allocation2 + $0x78] sm:$0xff] %v3101_v2  ;;  %v740_v12 = vmax.f32 %v710_v3, 0.0  ;;  %v713_v13 = vadd.f32 %v2961_v39, %v676_v4  ;;  %v675_v14 = vmul.f32 %v2956_v37, %v583_v8  ;;  %1306 = vmatmul.mubr.f32.gmra.mxu0 %v3114_v10 }
  0xfd   : > { %1165 = vmatprep.mubr.f32.mxu1 %v3112_v7  ;;  %1310 = vmatprep.mubr.f32.mxu0 %v3060_v47  ;;  %v2446_v17 = vpop.f32.mrf.mxu0  ;;  %v3137_v23 = vld [vmem:[#allocation2 + $0x49] sm:$0xff]  ;;  %v3166_v42 = vld [vmem:[#allocation2 + $0x51] sm:$0xff] }
  0xfe   : > { %2228 = vmatpush3.msra.mxu1 %v1005_v5  ;;  %770 = vst [vmem:[#allocation2 + $0x70] sm:$0xff] %v740_v12  ;;  %v743_v18 = vmax.f32 %v713_v13, 0.0  ;;  %v712_v19 = vadd.f32 %v2961_v39, %v675_v14  ;;  %v678_v20 = vmul.f32 %v2446_v17, %v2956_v37  ;;  %2302 = vmatpush3.msra.mxu0 %v1040_v11  ;;  %v3168_v44 = vld [vmem:[#allocation2 + $0x4a] sm:$0xff]  ;;  %v3195_v62 = vld [vmem:[#allocation2 + $0x52] sm:$0xff] }
  0xff   : > { %2229 = vmatprep.subr.mxu1 %v1020_v6  ;;  %v593_v26 = vpop.f32.mrf.mxu0  ;;  %2303 = vmatprep.subr.mxu0 %v1055_v15  ;;  %v1052_v6 = vld [vmem:[%s3788_s4 + $0x3c0] sm:$0xff]  ;;  %v1001_v13 = vld [vmem:[%s3788_s4 + $0x228] sm:$0xff] }
 0x100   : > { %1166 = vmatmul.mubr.f32.gmra.mxu1 %v2996_v9  ;;  %773 = vst [vmem:[#allocation2 + $0x88] sm:$0xff] %v743_v18  ;;  %v3144_v28 = vmax.f32 %v712_v19, 0.0  ;;  %v715_v29 = vadd.f32 %v2961_v39, %v678_v20  ;;  %1311 = vmatmul.mubr.f32.gmra.mxu0 %v3139_v25  ;;  %v677_v30 = vmul.f32 %v2956_v37, %v593_v26  ;;  %v1016_v15 = vld [vmem:[%s3788_s4 + $0x2a0] sm:$0xff] }
 0x101   : > { %1170 = vmatprep.mubr.f32.mxu1 %v3137_v23  ;;  %1315 = vmatprep.mubr.f32.mxu0 %v3090_v61  ;;  %v2449_v32 = vpop.f32.mrf.mxu0  ;;  %v3183_v54 = vld [vmem:[#allocation2 + $0x61] sm:$0xff] }
 0x102   : > { %2230 = vmatpush3.msra.mxu1 %v1004_v21  ;;  %772 = vst [vmem:[#allocation2 + $0x80] sm:$0xff] %v3144_v28  ;;  %v3155_v33 = vmax.f32 %v715_v29, 0.0  ;;  %v714_v35 = vadd.f32 %v2961_v39, %v677_v30  ;;  %v680_v38 = vmul.f32 %v2449_v32, %v2956_v37  ;;  %2304 = vmatpush3.msra.mxu0 %v1039_v27  ;;  %v3223_v18 = vld [vmem:[#allocation2 + $0x62] sm:$0xff]  ;;  %v1051_v27 = vld [vmem:[%s3788_s4 + $0x3b8] sm:$0xff] }
 0x103   : > { %2231 = vmatprep.subr.mxu1 %v1019_v22  ;;  %v603_v45 = vpop.f32.mrf.mxu0  ;;  %2305 = vmatprep.subr.mxu0 %v1054_v31  ;;  %v1036_v20 = vld [vmem:[%s3788_s4 + $0x340] sm:$0xff] }
 0x104   : > { %1171 = vmatmul.mubr.f32.gmra.mxu1 %v3022_v24  ;;  %775 = vst [vmem:[#allocation2 + $0x98] sm:$0xff] %v3155_v33  ;;  %v3175_v48 = vmax.f32 %v714_v35, 0.0  ;;  %v717_v49 = vadd.f32 %v2961_v39, %v680_v38  ;;  %1316 = vmatmul.mubr.f32.gmra.mxu0 %v3168_v44  ;;  %v679_v50 = vmul.f32 %v2956_v37, %v603_v45  ;;  %v1000_v32 = vld [vmem:[%s3788_s4 + $0x220] sm:$0xff]  ;;  %v1015_v35 = vld [vmem:[%s3788_s4 + $0x298] sm:$0xff] }
 0x105   : > { %1175 = vmatprep.mubr.f32.mxu1 %v3166_v42  ;;  %1320 = vmatprep.mubr.f32.mxu0 %v3073_v53  ;;  %v2452_v55 = vpop.f32.mrf.mxu0  ;;  %v3221_v17 = vld [vmem:[#allocation2 + $0x69] sm:$0xff]  ;;  %v1035_v45 = vld [vmem:[%s3788_s4 + $0x338] sm:$0xff] }
 0x106   : > { %2232 = vmatpush3.msra.mxu1 %v1003_v40  ;;  %774 = vst [vmem:[#allocation2 + $0x90] sm:$0xff] %v3175_v48  ;;  %v3187_v56 = vmax.f32 %v717_v49, 0.0  ;;  %v716_v57 = vadd.f32 %v2961_v39, %v679_v50  ;;  %v682_v59 = vmul.f32 %v2452_v55, %v2956_v37  ;;  %2306 = vmatpush3.msra.mxu0 %v1038_v46  ;;  %v1050_v50 = vld [vmem:[%s3788_s4 + $0x3b0] sm:$0xff] }
 0x107   : > { %2233 = vmatprep.subr.mxu1 %v1018_v41  ;;  %v613_v63 = vpop.f32.mrf.mxu0  ;;  %2307 = vmatprep.subr.mxu0 %v1053_v51  ;;  %v3252_v41 = vld [vmem:[#allocation2 + $0x6a] sm:$0xff] }
 0x108   : > { %1176 = vmatmul.mubr.f32.gmra.mxu1 %v3060_v47  ;;  %777 = vst [vmem:[#allocation2 + $0xa8] sm:$0xff] %v3187_v56  ;;  %v746_v3 = vmax.f32 %v716_v57, 0.0  ;;  %v719_v4 = vadd.f32 %v2961_v39, %v682_v59  ;;  %1321 = vmatmul.mubr.f32.gmra.mxu0 %v3195_v62  ;;  %v681_v5 = vmul.f32 %v2956_v37, %v613_v63  ;;  %v999_v59 = vld [vmem:[%s3788_s4 + $0x218] sm:$0xff] }
 0x109   : > { %1180 = vmatprep.mubr.f32.mxu1 %v3183_v54  ;;  %1325 = vmatprep.mubr.f32.mxu0 %v3101_v2  ;;  %v2455_v8 = vpop.f32.mrf.mxu0  ;;  %v3250_v40 = vld [vmem:[#allocation2 + $0x79] sm:$0xff] }
 0x10a   : > { %2234 = vmatpush3.msra.mxu1 %v1002_v60  ;;  %776 = vst [vmem:[#allocation2 + $0xa0] sm:$0xff] %v746_v3  ;;  %v749_v11 = vmax.f32 %v719_v4, 0.0  ;;  %v718_v12 = vadd.f32 %v2961_v39, %v681_v5  ;;  %v684_v14 = vmul.f32 %v2455_v8, %v2956_v37  ;;  %2308 = vmatpush3.msra.mxu0 %v1037_v1  ;;  %v1014_v60 = vld [vmem:[%s3788_s4 + $0x290] sm:$0xff]  ;;  %v3281_v3 = vld [vmem:[#allocation2 + $0x81] sm:$0xff] }
 0x10b   : > { %2235 = vmatprep.subr.mxu1 %v1017_v0  ;;  %v623_v19 = vpop.f32.mrf.mxu0  ;;  %2309 = vmatprep.subr.mxu0 %v1052_v6  ;;  %v3283_v4 = vld [vmem:[#allocation2 + $0x7a] sm:$0xff]  ;;  %v1034_v5 = vld [vmem:[%s3788_s4 + $0x330] sm:$0xff]  ;;  %v1049_v8 = vld [vmem:[%s3788_s4 + $0x3a8] sm:$0xff] }
 0x10c   : > { %1181 = vmatmul.mubr.f32.gmra.mxu1 %v3090_v61  ;;  %779 = vst [vmem:[#allocation2 + $0xb8] sm:$0xff] %v749_v11  ;;  %v3229_v21 = vmax.f32 %v718_v12, 0.0  ;;  %1326 = vmatmul.mubr.f32.gmra.mxu0 %v3223_v18  ;;  %v721_v22 = vadd.f32 %v2961_v39, %v684_v14  ;;  %v683_v26 = vmul.f32 %v2956_v37, %v623_v19 }
 0x10d   : > { %1185 = vmatprep.mubr.f32.mxu1 %v3221_v17  ;;  %1330 = vmatprep.mubr.f32.mxu0 %v3144_v28  ;;  %v2458_v29 = vpop.f32.mrf.mxu0  ;;  %v3297_v14 = vld [vmem:[#allocation2 + $0x91] sm:$0xff] }
 0x10e   : > { %2236 = vmatpush3.msra.mxu1 %v1001_v13  ;;  %778 = vst [vmem:[#allocation2 + $0xb0] sm:$0xff] %v3229_v21  ;;  %v3239_v30 = vmax.f32 %v721_v22, 0.0  ;;  %v720_v31 = vadd.f32 %v2961_v39, %v683_v26  ;;  %2310 = vmatpush3.msra.mxu0 %v1036_v20  ;;  %v686_v38 = vmul.f32 %v2458_v29, %v2956_v37  ;;  %v3307_v22 = vld [vmem:[#allocation2 + $0x82] sm:$0xff] }
 0x10f   : > { %2237 = vmatprep.subr.mxu1 %v1016_v15  ;;  %2311 = vmatprep.subr.mxu0 %v1051_v27  ;;  %v633_v46 = vpop.f32.mrf.mxu0  ;;  %v998_v15 = vld [vmem:[%s3788_s4 + $0x210] sm:$0xff]  ;;  %v1033_v26 = vld [vmem:[%s3788_s4 + $0x328] sm:$0xff] }
 0x110   : > { %1186 = vmatmul.mubr.f32.gmra.mxu1 %v3073_v53  ;;  %1331 = vmatmul.mubr.f32.gmra.mxu0 %v3252_v41  ;;  %781 = vst [vmem:[#allocation2 + $0xc8] sm:$0xff] %v3239_v30  ;;  %v3260_v49 = vmax.f32 %v720_v31, 0.0  ;;  %v3266_v51 = vadd.f32 %v2961_v39, %v686_v38  ;;  %v685_v55 = vmul.f32 %v2956_v37, %v633_v46  ;;  %v997_v29 = vld [vmem:[%s3788_s4 + $0x208] sm:$0xff]  ;;  %v1032_v31 = vld [vmem:[%s3788_s4 + $0x320] sm:$0xff] }
 0x111   : > { %1190 = vmatprep.mubr.f32.mxu1 %v3250_v40  ;;  %1335 = vmatprep.mubr.f32.mxu0 %v3175_v48  ;;  %v2461_v57 = vpop.f32.mrf.mxu0  ;;  %v1012_v38 = vld [vmem:[%s3788_s4 + $0x280] sm:$0xff] }
 0x112   : > { %2238 = vmatpush3.msra.mxu1 %v1000_v32  ;;  %780 = vst [vmem:[#allocation2 + $0xc0] sm:$0xff] %v3260_v49  ;;  %2312 = vmatpush3.msra.mxu0 %v1035_v45  ;;  %v753_v63 = vmax.f32 %v3266_v51, 0.0  ;;  %v722_v0 = vadd.f32 %v2961_v39, %v685_v55  ;;  %v688_v1 = vmul.f32 %v2461_v57, %v2956_v37  ;;  %v3331_v32 = vld [vmem:[#allocation2 + $0x99] sm:$0xff] }
 0x113   : > { %2239 = vmatprep.subr.mxu1 %v1015_v35  ;;  %2313 = vmatprep.subr.mxu0 %v1050_v50  ;;  %v643_v6 = vpop.f32.mrf.mxu0  ;;  %v3333_v35 = vld [vmem:[#allocation2 + $0x92] sm:$0xff]  ;;  %v996_v46 = vld [vmem:[%s3788_s4 + $0x200] sm:$0xff] }
 0x114   : > { %1191 = vmatmul.mubr.f32.gmra.mxu1 %v3101_v2  ;;  %1336 = vmatmul.mubr.f32.gmra.mxu0 %v3283_v4  ;;  %783 = vst [vmem:[#allocation2 + $0xd8] sm:$0xff] %v753_v63  ;;  %v752_v11 = vmax.f32 %v722_v0, 0.0  ;;  %v725_v12 = vadd.f32 %v2961_v39, %v688_v1  ;;  %v687_v13 = vmul.f32 %v2956_v37, %v643_v6  ;;  %v1013_v37 = vld [vmem:[%s3788_s4 + $0x288] sm:$0xff]  ;;  %v1047_v45 = vld [vmem:[%s3788_s4 + $0x398] sm:$0xff]  ;;  %v1030_v0 = vld [vmem:[%s3788_s4 + $0x310] sm:$0xff] }
 0x115   : > { %1195 = vmatprep.mubr.f32.mxu1 %v3281_v3  ;;  %1340 = vmatprep.mubr.f32.mxu0 %v3155_v33  ;;  %v1031_v50 = vld [vmem:[%s3788_s4 + $0x318] sm:$0xff]  ;;  %v3351_v55 = vld [vmem:[#allocation2 + $0xa9] sm:$0xff] }
 0x116   : > { %2240 = vmatpush3.msra.mxu1 %v999_v59  ;;  %2314 = vmatpush3.msra.mxu0 %v1034_v5  ;;  %782 = vst [vmem:[#allocation2 + $0xd0] sm:$0xff] %v752_v11  ;;  %v755_v19 = vmax.f32 %v725_v12, 0.0  ;;  %v3304_v20 = vadd.f32 %v2961_v39, %v687_v13  ;;  %v1048_v39 = vld [vmem:[%s3788_s4 + $0x3a0] sm:$0xff]  ;;  %v1075_v59 = vld [vmem:[%s3788_s4 + $0x478] sm:$0xff]  ;;  %v3370_v5 = vld [vmem:[#allocation2 + $0xaa] sm:$0xff] }
 0x117   : > { %2241 = vmatprep.subr.mxu1 %v1014_v60  ;;  %2315 = vmatprep.subr.mxu0 %v1049_v8  ;;  %v3353_v57 = vld [vmem:[#allocation2 + $0x9a] sm:$0xff]  ;;  %v1046_v60 = vld [vmem:[%s3788_s4 + $0x390] sm:$0xff]  ;;  %v1045_v6 = vld [vmem:[%s3788_s4 + $0x388] sm:$0xff] }
 0x118   : > { %1196 = vmatmul.mubr.f32.gmra.mxu1 %v3144_v28  ;;  %1341 = vmatmul.mubr.f32.gmra.mxu0 %v3307_v22  ;;  %785 = vst [vmem:[#allocation2 + $0xe8] sm:$0xff] %v755_v19  ;;  %v754_v27 = vmax.f32 %v3304_v20, 0.0  ;;  %v3368_v1 = vld [vmem:[#allocation2 + $0xb1] sm:$0xff]  ;;  %v1029_v8 = vld [vmem:[%s3788_s4 + $0x308] sm:$0xff]  ;;  %v1044_v11 = vld [vmem:[%s3788_s4 + $0x380] sm:$0xff] }
 0x119   : > { %1200 = vmatprep.mubr.f32.mxu1 %v3297_v14  ;;  %1345 = vmatprep.mubr.f32.mxu0 %v3187_v56  ;;  %v3385_v12 = vld [vmem:[#allocation2 + $0xb2] sm:$0xff]  ;;  %v1028_v13 = vld [vmem:[%s3788_s4 + $0x300] sm:$0xff]  ;;  %v1073_v19 = vld [vmem:[%s3788_s4 + $0x468] sm:$0xff] }
 0x11a   : > { %2242 = vmatpush3.msra.mxu1 %v998_v15  ;;  %2316 = vmatpush3.msra.mxu0 %v1033_v26  ;;  %784 = vst [vmem:[#allocation2 + $0xe0] sm:$0xff] %v754_v27  ;;  %v1074_v15 = vld [vmem:[%s3788_s4 + $0x470] sm:$0xff] }
 0x11b   : > { %2243 = vmatprep.subr.mxu1 %v1013_v37  ;;  %2317 = vmatprep.subr.mxu0 %v1048_v39 }
 0x11c   : > { %1201 = vmatmul.mubr.f32.gmra.mxu1 %v3175_v48  ;;  %1346 = vmatmul.mubr.f32.gmra.mxu0 %v3333_v35 }
 0x11d   : > { %1205 = vmatprep.mubr.f32.mxu1 %v3331_v32  ;;  %1350 = vmatprep.mubr.f32.mxu0 %v3229_v21 }
 0x11e   : > { %2244 = vmatpush3.msra.mxu1 %v997_v29  ;;  %2318 = vmatpush3.msra.mxu0 %v1032_v31 }
 0x11f   : > { %2245 = vmatprep.subr.mxu1 %v1012_v38  ;;  %2319 = vmatprep.subr.mxu0 %v1047_v45 }
 0x120   : > { %1206 = vmatmul.mubr.f32.gmra.mxu1 %v3155_v33  ;;  %1351 = vmatmul.mubr.f32.gmra.mxu0 %v3353_v57 }
 0x121   : > { %1210 = vmatprep.mubr.f32.mxu1 %v3351_v55  ;;  %1355 = vmatprep.mubr.f32.mxu0 %v3260_v49 }
 0x122   : > { %2246 = vmatpush3.msra.mxu1 %v996_v46  ;;  %2320 = vmatpush3.msra.mxu0 %v1031_v50 }
 0x123   : > { %2462 = vmatprep.subr.mxu1 %v1075_v59  ;;  %2321 = vmatprep.subr.mxu0 %v1046_v60 }
 0x124   : > { %1211 = vmatmul.mubr.f32.gmra.mxu1 %v3187_v56  ;;  %1356 = vmatmul.mubr.f32.gmra.mxu0 %v3370_v5 }
 0x125   : > { %1215 = vmatprep.mubr.f32.mxu1 %v3368_v1  ;;  %1360 = vmatprep.mubr.f32.mxu0 %v3239_v30 }
 0x126   : > { %2322 = vmatpush3.msra.mxu0 %v1030_v0 }
 0x127   : > { %2323 = vmatprep.subr.mxu0 %v1045_v6 }
 0x128   : > { %1216 = vmatmul.mubr.f32.gmra.mxu1 %v3229_v21  ;;  %2324 = vmatpush3.msra.mxu0 %v1029_v8 }
 0x129   : > { %1430 = vmatprep.mubr.f32.mxu1 %v3043_v36  ;;  %1361 = vmatmul.mubr.f32.gmra.mxu0 %v3385_v12  ;;  %v1072_v36 = vld [vmem:[%s3788_s4 + $0x460] sm:$0xff] }
 0x12a   : > { %1575 = vmatprep.mubr.f32.mxu0 %v3069_v52  ;;  %2325 = vmatprep.subr.mxu0 %v1044_v11 }
 0x12b   : > { %2326 = vmatpush3.msra.mxu0 %v1028_v13 }
 0x12c   : > { %1431 = vmatmul.mubr.f32.vlgmr.msra.gmra.mxu1 %v3040_v34  ;;  %v1071_v34 = vld [vmem:[%s3788_s4 + $0x458] sm:$0xff] }
 0x12d   : > { %2463 = vmatpush3.msra.mxu1 %v1075_v59  ;;  %1435 = vmatprep.mubr.f32.mxu1 %v3081_v58  ;;  %v1065_v58 = vld [vmem:[%s3788_s4 + $0x428] sm:$0xff] }
 0x12e   : > { %2464 = vmatprep.subr.mxu1 %v1074_v15  ;;  %1576 = vmatmul.mubr.f32.vlgmr.msra.gmra.mxu0 %v3011_v16  ;;  %v1070_v16 = vld [vmem:[%s3788_s4 + $0x450] sm:$0xff] }
 0x12f   : > { %2465 = vmatpush3.msra.mxu1 %v1074_v15  ;;  %1580 = vmatprep.mubr.f32.mxu0 %v3112_v7 }
 0x130   : > { %1436 = vmatmul.mubr.f32.gmra.mxu1 %v3052_v43  ;;  %2466 = vmatprep.subr.mxu1 %v1073_v19  ;;  %v1069_v43 = vld [vmem:[%s3788_s4 + $0x448] sm:$0xff] }
 0x131   : > { %1440 = vmatprep.mubr.f32.mxu1 %v3114_v10  ;;  %2467 = vmatpush3.msra.mxu1 %v1073_v19 }
 0x132   : > { %1581 = vmatmul.mubr.f32.gmra.mxu0 %v2996_v9  ;;  %2468 = vmatprep.subr.mxu1 %v1072_v36  ;;  %v1068_v9 = vld [vmem:[%s3788_s4 + $0x440] sm:$0xff] }
 0x133   : > { %1585 = vmatprep.mubr.f32.mxu0 %v3137_v23  ;;  %2469 = vmatpush3.msra.mxu1 %v1072_v36 }
 0x134   : > { %1441 = vmatmul.mubr.f32.gmra.mxu1 %v3069_v52  ;;  %2470 = vmatprep.subr.mxu1 %v1071_v34  ;;  %v1067_v52 = vld [vmem:[%s3788_s4 + $0x438] sm:$0xff] }
 0x135   : > { %1445 = vmatprep.mubr.f32.mxu1 %v3139_v25  ;;  %2471 = vmatpush3.msra.mxu1 %v1071_v34 }
 0x136   : > { %1586 = vmatmul.mubr.f32.gmra.mxu0 %v3022_v24  ;;  %2472 = vmatprep.subr.mxu1 %v1070_v16  ;;  %v1066_v24 = vld [vmem:[%s3788_s4 + $0x430] sm:$0xff] }
 0x137   : > { %1590 = vmatprep.mubr.f32.mxu0 %v3166_v42  ;;  %2473 = vmatpush3.msra.mxu1 %v1070_v16 }
 0x138   : > { %1446 = vmatmul.mubr.f32.gmra.mxu1 %v3112_v7  ;;  %2474 = vmatprep.subr.mxu1 %v1069_v43  ;;  %v1063_v7 = vld [vmem:[%s3788_s4 + $0x418] sm:$0xff] }
 0x139   : > { %1450 = vmatprep.mubr.f32.mxu1 %v3168_v44  ;;  %2475 = vmatpush3.msra.mxu1 %v1069_v43 }
 0x13a   : > { %1591 = vmatmul.mubr.f32.gmra.mxu0 %v3060_v47  ;;  %2476 = vmatprep.subr.mxu1 %v1068_v9  ;;  %v1064_v47 = vld [vmem:[%s3788_s4 + $0x420] sm:$0xff] }
 0x13b   : > { %1595 = vmatprep.mubr.f32.mxu0 %v3183_v54  ;;  %2477 = vmatpush3.msra.mxu1 %v1068_v9 }
 0x13c   : > { %1451 = vmatmul.mubr.f32.gmra.mxu1 %v3137_v23  ;;  %2478 = vmatprep.subr.mxu1 %v1067_v52  ;;  %v1061_v23 = vld [vmem:[%s3788_s4 + $0x408] sm:$0xff] }
 0x13d   : > { %1455 = vmatprep.mubr.f32.mxu1 %v3195_v62  ;;  %2479 = vmatpush3.msra.mxu1 %v1067_v52 }
 0x13e   : > { %1596 = vmatmul.mubr.f32.gmra.mxu0 %v3090_v61  ;;  %2480 = vmatprep.subr.mxu1 %v1066_v24  ;;  %v1062_v61 = vld [vmem:[%s3788_s4 + $0x410] sm:$0xff] }
 0x13f   : > { %1600 = vmatprep.mubr.f32.mxu0 %v3221_v17  ;;  %2481 = vmatpush3.msra.mxu1 %v1066_v24 }
 0x140   : > { %1456 = vmatmul.mubr.f32.gmra.mxu1 %v3166_v42  ;;  %2482 = vmatprep.subr.mxu1 %v1065_v58  ;;  %v914_v42 = vld [vmem:[#allocation2 + $0xd9] sm:$0xff] }
 0x141   : > { %1460 = vmatprep.mubr.f32.mxu1 %v3223_v18  ;;  %2483 = vmatpush3.msra.mxu1 %v1065_v58 }
 0x142   : > { %1601 = vmatmul.mubr.f32.gmra.mxu0 %v3073_v53  ;;  %2484 = vmatprep.subr.mxu1 %v1064_v47  ;;  %v1060_v53 = vld [vmem:[%s3788_s4 + $0x400] sm:$0xff] }
 0x143   : > { %1605 = vmatprep.mubr.f32.mxu0 %v3250_v40  ;;  %2485 = vmatpush3.msra.mxu1 %v1064_v47 }
 0x144   : > { %1461 = vmatmul.mubr.f32.gmra.mxu1 %v3183_v54  ;;  %2486 = vmatprep.subr.mxu1 %v1063_v7  ;;  %v915_v54 = vld [vmem:[#allocation2 + $0xe1] sm:$0xff] }
 0x145   : > { %1465 = vmatprep.mubr.f32.mxu1 %v3252_v41  ;;  %2487 = vmatpush3.msra.mxu1 %v1063_v7 }
 0x146   : > { %1606 = vmatmul.mubr.f32.gmra.mxu0 %v3101_v2  ;;  %2488 = vmatprep.subr.mxu1 %v1062_v61  ;;  %v912_v2 = vld [vmem:[#allocation2 + $0xc1] sm:$0xff] }
 0x147   : > { %1610 = vmatprep.mubr.f32.mxu0 %v3281_v3  ;;  %2489 = vmatpush3.msra.mxu1 %v1062_v61 }
 0x148   : > { %1466 = vmatmul.mubr.f32.gmra.mxu1 %v3221_v17  ;;  %2490 = vmatprep.subr.mxu1 %v1061_v23 }
 0x149   : > { %1470 = vmatprep.mubr.f32.mxu1 %v3283_v4  ;;  %2491 = vmatpush3.msra.mxu1 %v1061_v23 }
 0x14a   : > { %1611 = vmatmul.mubr.f32.gmra.mxu0 %v3144_v28  ;;  %2492 = vmatprep.subr.mxu1 %v1060_v53  ;;  %v913_v28 = vld [vmem:[#allocation2 + $0xc9] sm:$0xff] }
 0x14b   : > { %1615 = vmatprep.mubr.f32.mxu0 %v3297_v14  ;;  %2493 = vmatpush3.msra.mxu1 %v1060_v53 }
 0x14c   : > { %1471 = vmatmul.mubr.f32.gmra.mxu1 %v3250_v40 }
 0x14d   : > { %1475 = vmatprep.mubr.f32.mxu1 %v3307_v22 }
 0x14e   : > { %1616 = vmatmul.mubr.f32.gmra.mxu0 %v3175_v48  ;;  %v882_v48 = vld [vmem:[#allocation2 + $0xca] sm:$0xff] }
 0x14f   : > { %1620 = vmatprep.mubr.f32.mxu0 %v3331_v32 }
 0x150   : > { %1476 = vmatmul.mubr.f32.gmra.mxu1 %v3281_v3 }
 0x151   : > { %1480 = vmatprep.mubr.f32.mxu1 %v3333_v35 }
 0x152   : > { %1621 = vmatmul.mubr.f32.gmra.mxu0 %v3155_v33  ;;  %v881_v33 = vld [vmem:[#allocation2 + $0xc2] sm:$0xff] }
 0x153   : > { %1625 = vmatprep.mubr.f32.mxu0 %v3351_v55 }
 0x154   : > { %1481 = vmatmul.mubr.f32.gmra.mxu1 %v3297_v14 }
 0x155   : > { %1485 = vmatprep.mubr.f32.mxu1 %v3353_v57 }
 0x156   : > { %1626 = vmatmul.mubr.f32.gmra.mxu0 %v3187_v56 }
 0x157   : > { %1630 = vmatprep.mubr.f32.mxu0 %v3368_v1 }
 0x158   : > { %1486 = vmatmul.mubr.f32.gmra.mxu1 %v3331_v32 }
 0x159   : > { %1490 = vmatprep.mubr.f32.mxu1 %v3370_v5 }
 0x15a   : > { %1631 = vmatmul.mubr.f32.gmra.mxu0 %v3229_v21 }
 0x15b   : > { %1635 = vmatprep.mubr.f32.mxu0 %v912_v2 }
 0x15c   : > { %1491 = vmatmul.mubr.f32.gmra.mxu1 %v3351_v55 }
 0x15d   : > { %1495 = vmatprep.mubr.f32.mxu1 %v3385_v12 }
 0x15e   : > { %1636 = vmatmul.mubr.f32.gmra.mxu0 %v3260_v49 }
 0x15f   : > { %1640 = vmatprep.mubr.f32.mxu0 %v913_v28 }
 0x160   : > { %1496 = vmatmul.mubr.f32.gmra.mxu1 %v3368_v1 }
 0x161   : > { %1500 = vmatprep.mubr.f32.mxu1 %v881_v33 }
 0x162   : > { %1641 = vmatmul.mubr.f32.gmra.mxu0 %v3239_v30 }
 0x163   : > { %1645 = vmatprep.mubr.f32.mxu0 %v914_v42 }
 0x164   : > { %1501 = vmatmul.mubr.f32.gmra.mxu1 %v912_v2 }
 0x165   : > { %1505 = vmatprep.mubr.f32.mxu1 %v882_v48 }
 0x166   : > { %1646 = vmatmul.mubr.f32.gmra.mxu0 %v753_v63 }
 0x167   : > { %1650 = vmatprep.mubr.f32.mxu0 %v915_v54 }
 0x168   : > { %1506 = vmatmul.mubr.f32.gmra.mxu1 %v913_v28 }
 0x169   : > { %2494 = vmatprep.mubr.f32.mxu1 %v3114_v10  ;;  %v930_v10 = vld [vmem:[#allocation2 + $0xda] sm:$0xff] }
 0x16a   : > { %1651 = vmatmul.mubr.f32.gmra.mxu0 %v754_v27 }
 0x16c   : > { %2495 = vmatmul.mubr.f32.vlgmr.msra.gmra.mxu1 %v3139_v25  ;;  %v931_v25 = vld [vmem:[#allocation2 + $0xe2] sm:$0xff] }
 0x16d   : > { %2497 = vmatprep.mubr.f32.mxu1 %v3168_v44 }
 0x170   : > { %2498 = vmatmul.mubr.f32.gmra.mxu1 %v3195_v62 }
 0x171   : > { %2500 = vmatprep.mubr.f32.mxu1 %v3223_v18 }
 0x174   : > { %2501 = vmatmul.mubr.f32.gmra.mxu1 %v3252_v41 }
 0x175   : > { %2503 = vmatprep.mubr.f32.mxu1 %v3283_v4 }
 0x178   : > { %2504 = vmatmul.mubr.f32.gmra.mxu1 %v3307_v22 }
 0x179   : > { %2506 = vmatprep.mubr.f32.mxu1 %v3333_v35 }
 0x17c   : > { %2507 = vmatmul.mubr.f32.gmra.mxu1 %v3353_v57 }
 0x17d   : > { %2509 = vmatprep.mubr.f32.mxu1 %v3370_v5 }
 0x180   : > { %2510 = vmatmul.mubr.f32.gmra.mxu1 %v3385_v12 }
 0x181   : > { %2512 = vmatprep.mubr.f32.mxu1 %v881_v33 }
 0x184   : > { %2513 = vmatmul.mubr.f32.gmra.mxu1 %v882_v48 }
 0x185   : > { %2515 = vmatprep.mubr.f32.mxu1 %v930_v10 }
 0x188   : > { %2516 = vmatmul.mubr.f32.gmra.mxu1 %v931_v25 }
 0x1ab   : > { %v2167_v44 = vpop.f32.mrf.mxu0  ;;  %v2087_v56 = vpop.f32.mrf.mxu1 }
 0x1ad   : > { %v2168_v62 = vpop.f32.mrf.mxu0  ;;  %v2088_v17 = vpop.f32.mrf.mxu1 }
 0x1ae   : > { %v2169_v18 = vadd.f32 %v2168_v62, %v2167_v44  ;;  %v2089_v21 = vadd.f32 %v2088_v17, %v2087_v56 }
 0x1af   : > { %v2170_v41 = vpop.f32.mrf.mxu0 }
 0x1b0   : > { %v2090_v30 = vpop.f32.mrf.mxu1  ;;  %v3506_v40 = vadd.f32 %v2169_v18, %v2089_v21 }
 0x1b1   : > { %v2171_v63 = vpop.f32.mrf.mxu0 }
 0x1b2   : > { %v2091_v49 = vpop.f32.mrf.mxu1  ;;  %v2172_v4 = vadd.f32 %v2171_v63, %v2170_v41 }
 0x1b3   : > { %v2092_v51 = vadd.f32 %v2091_v49, %v2090_v30  ;;  %v2173_v14 = vpop.f32.mrf.mxu0 }
 0x1b4   : > { %v2093_v3 = vpop.f32.mrf.mxu1 }
 0x1b5   : > { %v3508_v22 = vadd.f32 %v2172_v4, %v2092_v51  ;;  %v2174_v26 = vpop.f32.mrf.mxu0 }
 0x1b6   : > { %v2094_v20 = vpop.f32.mrf.mxu1  ;;  %v2175_v27 = vadd.f32 %v2174_v26, %v2173_v14 }
 0x1b7   : > { %v2095_v37 = vadd.f32 %v2094_v20, %v2093_v3 }
 0x1b8   : > { %v2096_v39 = vpop.f32.mrf.mxu1  ;;  %v2176_v29 = vpop.f32.mrf.mxu0 }
 0x1b9   : > { %v3510_v32 = vadd.f32 %v2175_v27, %v2095_v37 }
 0x1ba   : > { %v2097_v31 = vpop.f32.mrf.mxu1  ;;  %v2177_v38 = vpop.f32.mrf.mxu0 }
 0x1bb   : > { %v2098_v35 = vadd.f32 %v2097_v31, %v2096_v39  ;;  %v2178_v46 = vadd.f32 %v2177_v38, %v2176_v29 }
 0x1bc   : > { %v2099_v45 = vpop.f32.mrf.mxu1  ;;  %v2179_v50 = vpop.f32.mrf.mxu0 }
 0x1bd   : > { %v3512_v57 = vadd.f32 %v2178_v46, %v2098_v35 }
 0x1be   : > { %v2100_v55 = vpop.f32.mrf.mxu1  ;;  %v2180_v60 = vpop.f32.mrf.mxu0 }
 0x1bf   : > { %v2101_v59 = vadd.f32 %v2100_v55, %v2099_v45  ;;  %v2181_v1 = vadd.f32 %v2180_v60, %v2179_v50 }
 0x1c0   : > { %v2102_v0 = vpop.f32.mrf.mxu1  ;;  %v2182_v5 = vpop.f32.mrf.mxu0 }
 0x1c1   : > { %v3514_v8 = vadd.f32 %v2181_v1, %v2101_v59 }
 0x1c2   : > { %v2103_v6 = vpop.f32.mrf.mxu1  ;;  %v2183_v12 = vpop.f32.mrf.mxu0 }
 0x1c3   : > { %v2104_v11 = vadd.f32 %v2103_v6, %v2102_v0  ;;  %v2184_v15 = vadd.f32 %v2183_v12, %v2182_v5 }
 0x1c4   : > { %v2105_v13 = vpop.f32.mrf.mxu1  ;;  %v2185_v19 = vpop.f32.mrf.mxu0 }
 0x1c5   : > { %v3516_v34 = vadd.f32 %v2184_v15, %v2104_v11 }
 0x1c6   : > { %v2106_v36 = vpop.f32.mrf.mxu1  ;;  %v2186_v43 = vpop.f32.mrf.mxu0 }
 0x1c7   : > { %v2107_v16 = vadd.f32 %v2106_v36, %v2105_v13  ;;  %v2187_v52 = vadd.f32 %v2186_v43, %v2185_v19 }
 0x1c8   : > { %v2108_v9 = vpop.f32.mrf.mxu1  ;;  %v2188_v24 = vpop.f32.mrf.mxu0 }
 0x1c9   : > { %v3518_v47 = vadd.f32 %v2187_v52, %v2107_v16 }
 0x1ca   : > { %v2109_v58 = vpop.f32.mrf.mxu1  ;;  %v2189_v61 = vpop.f32.mrf.mxu0 }
 0x1cb   : > { %v2110_v7 = vadd.f32 %v2109_v58, %v2108_v9  ;;  %v2190_v53 = vadd.f32 %v2189_v61, %v2188_v24 }
 0x1cc   : > { %v2111_v23 = vpop.f32.mrf.mxu1  ;;  %v2191_v2 = vpop.f32.mrf.mxu0 }
 0x1cd   : > { %v3520_v33 = vadd.f32 %v2190_v53, %v2110_v7 }
 0x1ce   : > { %v2112_v28 = vpop.f32.mrf.mxu1  ;;  %v2192_v48 = vpop.f32.mrf.mxu0 }
 0x1cf   : > { %v2113_v42 = vadd.f32 %v2112_v28, %v2111_v23  ;;  %v2193_v10 = vadd.f32 %v2192_v48, %v2191_v2 }
 0x1d0   : > { %v2114_v54 = vpop.f32.mrf.mxu1  ;;  %v2194_v25 = vpop.f32.mrf.mxu0 }
 0x1d1   : > { %v3522_v56 = vadd.f32 %v2193_v10, %v2113_v42 }
 0x1d2   : > { %v2115_v44 = vpop.f32.mrf.mxu1  ;;  %v2195_v17 = vpop.f32.mrf.mxu0 }
 0x1d3   : > { %v2116_v62 = vadd.f32 %v2115_v44, %v2114_v54  ;;  %v2196_v21 = vadd.f32 %v2195_v17, %v2194_v25 }
 0x1d4   : > { %v2117_v18 = vpop.f32.mrf.mxu1  ;;  %v2197_v30 = vpop.f32.mrf.mxu0 }
 0x1d5   : > { %v3524_v49 = vadd.f32 %v2196_v21, %v2116_v62 }
 0x1d6   : > { %v2118_v41 = vpop.f32.mrf.mxu1  ;;  %v2198_v63 = vpop.f32.mrf.mxu0 }
 0x1d7   : > { %v2119_v51 = vadd.f32 %v2118_v41, %v2117_v18  ;;  %v2199_v4 = vadd.f32 %v2198_v63, %v2197_v30 }
 0x1d8   : > { %v2120_v3 = vpop.f32.mrf.mxu1  ;;  %v2200_v14 = vpop.f32.mrf.mxu0 }
 0x1d9   : > { %v3526_v37 = vadd.f32 %v2199_v4, %v2119_v51 }
 0x1da   : > { %v2121_v20 = vpop.f32.mrf.mxu1  ;;  %v2201_v39 = vpop.f32.mrf.mxu0 }
 0x1db   : > { %3792 = vst [vmem:[#allocation3_spill] sm:$0xff] %v3526_v37  ;;  %v2122_v26 = vadd.f32 %v2121_v20, %v2120_v3  ;;  %v2202_v29 = vadd.f32 %v2201_v39, %v2200_v14 }
 0x1dc   : > { %v2123_v27 = vpop.f32.mrf.mxu1  ;;  %v2203_v31 = vpop.f32.mrf.mxu0 }
 0x1dd   : > { %v3528_v38 = vadd.f32 %v2202_v29, %v2122_v26 }
 0x1de   : > { %v2124_v35 = vpop.f32.mrf.mxu1  ;;  %v2204_v46 = vpop.f32.mrf.mxu0 }
 0x1df   : > { %3793 = vst [vmem:[#allocation4_spill] sm:$0xff] %v3528_v38  ;;  %v2125_v45 = vadd.f32 %v2124_v35, %v2123_v27  ;;  %v2205_v55 = vadd.f32 %v2204_v46, %v2203_v31 }
 0x1e0   : > { %v2126_v50 = vpop.f32.mrf.mxu1  ;;  %v2206_v59 = vpop.f32.mrf.mxu0 }
 0x1e1   : > { %v3530_v0 = vadd.f32 %v2205_v55, %v2125_v45 }
 0x1e2   : > { %v2127_v60 = vpop.f32.mrf.mxu1  ;;  %v2207_v5 = vpop.f32.mrf.mxu0 }
 0x1e3   : > { %3794 = vst [vmem:[#allocation5_spill] sm:$0xff] %v3530_v0  ;;  %v2128_v1 = vadd.f32 %v2127_v60, %v2126_v50  ;;  %v2208_v11 = vadd.f32 %v2207_v5, %v2206_v59 }
 0x1e4   : > { %v2129_v6 = vpop.f32.mrf.mxu1  ;;  %v2209_v12 = vpop.f32.mrf.mxu0 }
 0x1e5   : > { %v3532_v15 = vadd.f32 %v2208_v11, %v2128_v1 }
 0x1e6   : > { %v2130_v13 = vpop.f32.mrf.mxu1  ;;  %v2210_v36 = vpop.f32.mrf.mxu0 }
 0x1e7   : > { %3795 = vst [vmem:[#allocation6_spill] sm:$0xff] %v3532_v15  ;;  %v2131_v19 = vadd.f32 %v2130_v13, %v2129_v6  ;;  %v2211_v43 = vadd.f32 %v2210_v36, %v2209_v12 }
 0x1e8   : > { %v2132_v16 = vpop.f32.mrf.mxu1 }
 0x1e9   : > { %v3534_v9 = vpop.f32.mrf.mxu0  ;;  %v3536_v24 = vadd.f32 %v2211_v43, %v2131_v19 }
 0x1ea   : > { %v2133_v52 = vpop.f32.mrf.mxu1 }
 0x1eb   : > { %3796 = vst [vmem:[#allocation7_spill] sm:$0xff] %v3536_v24  ;;  %v3538_v58 = vadd.f32 %v2133_v52, %v2132_v16  ;;  %v3540_v7 = vpop.f32.mrf.mxu0 }
 0x1ec   : > { %v2247_v61 = vpop.f32.mrf.mxu1 }
 0x1ee   : > { %v2248_v23 = vpop.f32.mrf.mxu1  ;;  %v3542_v53 = vpop.f32.mrf.mxu0 }
 0x1f0   : > { %v2250_v2 = vpop.f32.mrf.mxu1  ;;  %v3544_v28 = vpop.f32.mrf.mxu0 }
 0x1f2   : > { %v2251_v42 = vpop.f32.mrf.mxu1  ;;  %v2330_v48 = vpop.f32.mrf.mxu0 }
 0x1f4   : > { %v2253_v54 = vpop.f32.mrf.mxu1  ;;  %v2331_v10 = vpop.f32.mrf.mxu0 }
 0x1f6   : > { %v2254_v25 = vpop.f32.mrf.mxu1  ;;  %v3546_v44 = vpop.f32.mrf.mxu0 }
 0x1f8   : > { %v2256_v62 = vpop.f32.mrf.mxu1  ;;  %v3548_v17 = vpop.f32.mrf.mxu0 }
 0x1fa   : > { %v2257_v18 = vpop.f32.mrf.mxu1  ;;  %v3550_v21 = vpop.f32.mrf.mxu0 }
 0x1fc   : > { %v2259_v30 = vpop.f32.mrf.mxu1  ;;  %v3552_v41 = vpop.f32.mrf.mxu0 }
 0x1fe   : > { %v2260_v51 = vpop.f32.mrf.mxu1  ;;  %v3554_v63 = vpop.f32.mrf.mxu0 }
 0x200   : > { %v2262_v3 = vpop.f32.mrf.mxu1  ;;  %v3556_v4 = vpop.f32.mrf.mxu0 }
 0x202   : > { %v2263_v14 = vpop.f32.mrf.mxu1  ;;  %v3558_v20 = vpop.f32.mrf.mxu0 }
 0x204   : > { %v3560_v26 = vpop.f32.mrf.mxu1  ;;  %v3562_v39 = vpop.f32.mrf.mxu0 }
 0x206   : > { %v3564_v27 = vpop.f32.mrf.mxu1  ;;  %v3566_v29 = vpop.f32.mrf.mxu0 }
 0x208   : > { %v2268_v31 = vpop.f32.mrf.mxu1  ;;  %v3568_v35 = vpop.f32.mrf.mxu0 }
 0x20a   : > { %v2269_v45 = vpop.f32.mrf.mxu1  ;;  %v3570_v46 = vpop.f32.mrf.mxu0 }
 0x20c   : > { %v3572_v50 = vpop.f32.mrf.mxu1  ;;  %v3574_v55 = vpop.f32.mrf.mxu0 }
 0x20e   : > { %v3576_v59 = vpop.f32.mrf.mxu1  ;;  %v3578_v60 = vpop.f32.mrf.mxu0 }
 0x20f   : > { %3797 = vst [vmem:[#allocation8_spill] sm:$0xff] %v3578_v60 }
 0x210   : > { %v3580_v1 = vpop.f32.mrf.mxu1  ;;  %v3582_v5 = vpop.f32.mrf.mxu0 }
 0x211   : > { %3798 = vst [vmem:[#allocation9_spill] sm:$0xff] %v3582_v5  ;;  %v2252_v5 = vadd.f32 %v2251_v42, %v2250_v2  ;;  %v2264_v2 = vadd.f32 %v2263_v14, %v2262_v3 }
 0x212   : > { %v3584_v6 = vpop.f32.mrf.mxu1  ;;  %v3586_v11 = vpop.f32.mrf.mxu0 }
 0x213   : > { %3799 = vst [vmem:[#allocation10_spill] sm:$0xff] %v3586_v11 }
 0x214   : > { %v3588_v12 = vpop.f32.mrf.mxu1  ;;  %v3590_v13 = vpop.f32.mrf.mxu0 }
 0x215   : > { %3800 = vst [vmem:[#allocation11_spill] sm:$0xff] %v3588_v12  ;;  %3801 = vst [vmem:[#allocation12_spill] sm:$0xff] %v3590_v13 }
 0x216   : > { %v3592_v19 = vpop.f32.mrf.mxu1  ;;  %v3594_v36 = vpop.f32.mrf.mxu0 }
 0x217   : > { %3802 = vst [vmem:[#allocation13_spill] sm:$0xff] %v3592_v19  ;;  %3803 = vst [vmem:[#allocation14_spill] sm:$0xff] %v3594_v36  ;;  %v2332_v19 = vadd.f32 %v2331_v10, %v2330_v48  ;;  %v3640_v48 = vld [vmem:[%s3789_s5] ss:$0 sm:$0xff] }
 0x218   : > { %v3596_v16 = vpop.f32.mrf.mxu1  ;;  %v3598_v43 = vpop.f32.mrf.mxu0 }
 0x219   : > { %3804 = vst [vmem:[#allocation15_spill] sm:$0xff] %v3598_v43  ;;  %v2249_v43 = vadd.f32 %v2248_v23, %v2247_v61  ;;  %v2329_v23 = vadd.f32 %v3544_v28, %v3542_v53  ;;  %v2338_v53 = vadd.f32 %v3552_v41, %v3550_v21  ;;  %v3651_v28 = vld [vmem:[%s3790_s6] ss:$0 sm:$0xff]  ;;  %v2344_v41 = vadd.f32 %v3562_v39, %v3558_v20 }
 0x21a   : > { %v3600_v52 = vpop.f32.mrf.mxu1  ;;  %v3604_v0 = vpop.f32.mrf.mxu0 }
 0x21b   : > { %3806 = vst [vmem:[#allocation17_spill] sm:$0xff] %v3604_v0  ;;  %v1438_v0 = vadd.f32 %v2252_v5, %v3508_v22 }
 0x21c   : > { %v3602_v24 = vpop.f32.mrf.mxu1  ;;  %v3611_v38 = vpop.f32.mrf.mxu0 }
 0x21d   : > { %3805 = vst [vmem:[#allocation16_spill] sm:$0xff] %v3602_v24  ;;  %3809 = vst [vmem:[#allocation20_spill] sm:$0xff] %v3611_v38  ;;  %v1433_v38 = vadd.f32 %v2249_v43, %v3506_v40  ;;  %v1583_v22 = vadd.f32 %v2332_v19, %v1438_v0 }
 0x21e   : > { %v3606_v15 = vpop.f32.mrf.mxu1  ;;  %v3617_v13 = vpop.f32.mrf.mxu0 }
 0x21f   : > { %3807 = vst [vmem:[#allocation18_spill] sm:$0xff] %v3606_v15  ;;  %v2258_v15 = vadd.f32 %v2257_v18, %v2256_v62  ;;  %v2214_v62 = vadd.f32 %v3540_v7, %v3534_v9  ;;  %v2261_v18 = vadd.f32 %v2260_v51, %v2259_v30  ;;  %v1458_v9 = vadd.f32 %v2264_v2, %v3516_v34 }
 0x220   : > { %v3609_v37 = vpop.f32.mrf.mxu1  ;;  %v3625_v12 = vpop.f32.mrf.mxu0  ;;  %v2270_v7 = vadd.f32 %v2269_v45, %v2268_v31 }
 0x221   : > { %3808 = vst [vmem:[#allocation19_spill] sm:$0xff] %v3609_v37  ;;  %v2255_v37 = vadd.f32 %v2254_v25, %v2253_v54  ;;  %v1448_v42 = vadd.f32 %v2258_v15, %v3512_v57  ;;  %v1578_v15 = vadd.f32 %v2329_v23, %v1433_v38  ;;  %v2335_v25 = vadd.f32 %v3548_v17, %v3546_v44 }
 0x222   : > { %v3613_v36 = vpop.f32.mrf.mxu1  ;;  %v3645_v57 = vpop.f32.mrf.mxu0  ;;  %v3658_v30 = vadd.f32 %v2214_v62, %v3538_v58  ;;  %v1453_v34 = vadd.f32 %v2261_v18, %v3514_v8  ;;  %v2267_v38 = vadd.f32 %v3564_v27, %v3560_v26  ;;  %v2341_v58 = vadd.f32 %v3556_v4, %v3554_v63 }
 0x223   : > { %v1443_v54 = vadd.f32 %v2255_v37, %v3510_v32  ;;  %v1593_v21 = vadd.f32 %v2338_v53, %v1448_v42  ;;  %v1468_v8 = vadd.f32 %v2270_v7, %v3520_v33  ;;  %v2276_v26 = vadd.f32 %v3584_v6, %v3580_v1 }
 0x224   : > { %v3615_v60 = vpop.f32.mrf.mxu1  ;;  %v3665_v3 = vpop.f32.mrf.mxu0  ;;  %v1603_v39 = vadd.f32 %v2344_v41, %v1458_v9  ;;  %v1463_v63 = vadd.f32 %v2267_v38, %v3518_v47  ;;  %v2273_v33 = vadd.f32 %v3576_v59, %v3572_v50  ;;  %v2350_v4 = vadd.f32 %v3574_v55, %v3570_v46  ;;  %v3813_v9 = vld [vmem:[#allocation12_spill] sm:$0xff] }
 0x225   : > { %v1588_v31 = vadd.f32 %v2335_v25, %v1443_v54  ;;  %v1598_v6 = vadd.f32 %v2341_v58, %v1453_v34  ;;  %v2347_v47 = vadd.f32 %v3568_v35, %v3566_v29  ;;  %v1478_v50 = vadd.f32 %v2276_v26, %v3524_v49  ;;  %v3812_v35 = vld [vmem:[#allocation10_spill] sm:$0xff]  ;;  %v3816_v38 = vld [vmem:[#allocation4_spill] sm:$0xff] }
 0x226   : > { %v3619_v24 = vpop.f32.mrf.mxu1  ;;  %v3686_v43 = vpop.f32.mrf.mxu0  ;;  %v2282_v46 = vadd.f32 %v3600_v52, %v3596_v16  ;;  %v1613_v59 = vadd.f32 %v2350_v4, %v1468_v8  ;;  %v1473_v53 = vadd.f32 %v2273_v33, %v3522_v56  ;;  %v2356_v49 = vadd.f32 %v3813_v9, %v3812_v35  ;;  %v3815_v56 = vld [vmem:[#allocation9_spill] sm:$0xff]  ;;  %v3822_v33 = vld [vmem:[#allocation20_spill] sm:$0xff] }
 0x227   : > { %v1608_v16 = vadd.f32 %v2347_v47, %v1463_v63  ;;  %v3821_v63 = vld [vmem:[#allocation17_spill] sm:$0xff]  ;;  %v3824_v47 = vld [vmem:[#allocation15_spill] sm:$0xff]  ;;  %v2291_v9 = vadd.f32 %v3619_v24, %v3615_v60 }
 0x228   : > { %v3622_v11 = vpop.f32.mrf.mxu1  ;;  %v3704_v52 = vpop.f32.mrf.mxu0  ;;  %v1488_v41 = vadd.f32 %v2282_v46, %v3816_v38  ;;  %v2362_v4 = vadd.f32 %v3822_v33, %v3821_v63  ;;  %v3825_v46 = vld [vmem:[#allocation6_spill] sm:$0xff]  ;;  %v3827_v38 = vld [vmem:[#allocation7_spill] sm:$0xff] }
 0x22a   : > { %v3628_v61 = vpop.f32.mrf.mxu1 }
 0x22c   : > { %v2496_v40 = vpop.f32.mrf.mxu1 }
 0x22d   : > { %v1728_v0 = vadd.f32 %v2496_v40, %v1583_v22 }
 0x22e   : > { %v1722_v10 = vpop.f32.mrf.mxu1 }
 0x22f   : > { %v1809_v32 = vmul.f32 %v3640_v48, %v1728_v0  ;;  %v1723_v37 = vadd.f32 %v1722_v10, %v1578_v15  ;;  %v3810_v0 = vld [vmem:[#allocation11_spill] sm:$0xff]  ;;  %v3811_v15 = vld [vmem:[#allocation13_spill] sm:$0xff] }
 0x230   : > { %v2499_v51 = vpop.f32.mrf.mxu1  ;;  %v2279_v29 = vadd.f32 %v3811_v15, %v3810_v0 }
 0x231   : > { %v1832_v44 = vadd.f32 %v3651_v28, %v1809_v32  ;;  %v1808_v17 = vmul.f32 %v3640_v48, %v1723_v37  ;;  %v1738_v14 = vadd.f32 %v2499_v51, %v1593_v21  ;;  %v3814_v21 = vld [vmem:[#allocation8_spill] sm:$0xff]  ;;  %v3817_v51 = vld [vmem:[#allocation19_spill] sm:$0xff] }
 0x232   : > { %v1732_v20 = vpop.f32.mrf.mxu1  ;;  %v2353_v34 = vadd.f32 %v3815_v56, %v3814_v21 }
 0x233   : > { %v1848_v27 = vmax.f32 %v1832_v44, 0.0  ;;  %v1831_v45 = vadd.f32 %v3651_v28, %v1808_v17  ;;  %v1811_v5 = vmul.f32 %v3640_v48, %v1738_v14  ;;  %v1733_v19 = vadd.f32 %v1732_v20, %v1588_v31  ;;  %v2372_v31 = vpop.f32.mrf.mxu0 }
 0x234   : > { %v2502_v1 = vpop.f32.mrf.mxu1  ;;  %v2288_v44 = vadd.f32 %v3613_v36, %v3817_v51  ;;  %v1623_v14 = vadd.f32 %v2356_v49, %v1478_v50  ;;  %v2368_v49 = vadd.f32 %v3665_v3, %v3645_v57 }
 0x235   : > { %1864 = vst [vmem:[%s3677_s9 + $0x8] sm:$0xff] %v1848_v27  ;;  %v1847_v2 = vmax.f32 %v1831_v45, 0.0  ;;  %v1834_v23 = vadd.f32 %v3651_v28, %v1811_v5  ;;  %v1810_v42 = vmul.f32 %v3640_v48, %v1733_v19  ;;  %v1748_v22 = vadd.f32 %v2502_v1, %v1603_v39  ;;  %v3818_v39 = vld [vmem:[#allocation3_spill] sm:$0xff]  ;;  %v3819_v45 = vld [vmem:[#allocation16_spill] sm:$0xff]  ;;  %v3820_v5 = vld [vmem:[#allocation18_spill] sm:$0xff] }
 0x236   : > { %v1742_v55 = vpop.f32.mrf.mxu1  ;;  %v1483_v27 = vadd.f32 %v2279_v29, %v3818_v39  ;;  %v2285_v19 = vadd.f32 %v3820_v5, %v3819_v45  ;;  %v1618_v1 = vadd.f32 %v2353_v34, %v1473_v53  ;;  %v3826_v29 = vld [vmem:[#allocation5_spill] sm:$0xff] }
 0x237   : > { %1863 = vst [vmem:[%s3677_s9] sm:$0xff] %v1847_v2  ;;  %v1850_v62 = vmax.f32 %v1834_v23, 0.0  ;;  %v1833_v18 = vadd.f32 %v3651_v28, %v1810_v42  ;;  %v1813_v40 = vmul.f32 %v3640_v48, %v1748_v22  ;;  %v1743_v54 = vadd.f32 %v1742_v55, %v1598_v6  ;;  %v3823_v22 = vld [vmem:[#allocation14_spill] sm:$0xff] }
 0x238   : > { %v2505_v7 = vpop.f32.mrf.mxu1  ;;  %v2359_v50 = vadd.f32 %v3824_v47, %v3823_v22  ;;  %v1498_v55 = vadd.f32 %v2288_v44, %v3825_v46  ;;  %v1493_v35 = vadd.f32 %v2285_v19, %v3826_v29 }
 0x239   : > { %1866 = vst [vmem:[%s3677_s9 + $0x18] sm:$0xff] %v1850_v62  ;;  %v1849_v10 = vmax.f32 %v1833_v18, 0.0  ;;  %v1836_v25 = vadd.f32 %v3651_v28, %v1813_v40  ;;  %v1812_v32 = vmul.f32 %v3640_v48, %v1743_v54  ;;  %v1758_v37 = vadd.f32 %v2505_v7, %v1613_v59  ;;  %v2373_v40 = vpop.f32.mrf.mxu0 }
 0x23a   : > { %v1752_v17 = vpop.f32.mrf.mxu1  ;;  %v2294_v59 = vadd.f32 %v3628_v61, %v3622_v11  ;;  %v1633_v18 = vadd.f32 %v2362_v4, %v1488_v41  ;;  %v1628_v61 = vadd.f32 %v2359_v50, %v1483_v27  ;;  %v2374_v21 = vadd.f32 %v2373_v40, %v2372_v31 }
 0x23b   : > { %1865 = vst [vmem:[%s3677_s9 + $0x10] sm:$0xff] %v1849_v10  ;;  %v1852_v58 = vmax.f32 %v1836_v25, 0.0  ;;  %v1835_v8 = vadd.f32 %v3651_v28, %v1812_v32  ;;  %v1815_v26 = vmul.f32 %v3640_v48, %v1758_v37  ;;  %v1753_v20 = vadd.f32 %v1752_v17, %v1608_v16 }
 0x23c   : > { %v2508_v36 = vpop.f32.mrf.mxu1  ;;  %v2365_v32 = vadd.f32 %v3625_v12, %v3617_v13  ;;  %v1508_v37 = vadd.f32 %v2294_v59, %v3658_v30  ;;  %v1643_v60 = vadd.f32 %v2368_v49, %v1498_v55  ;;  %v1503_v41 = vadd.f32 %v2291_v9, %v3827_v38 }
 0x23d   : > { %1868 = vst [vmem:[%s3677_s9 + $0x28] sm:$0xff] %v1852_v58  ;;  %v1851_v6 = vmax.f32 %v1835_v8, 0.0  ;;  %v1838_v2 = vadd.f32 %v3651_v28, %v1815_v26  ;;  %v1814_v23 = vmul.f32 %v3640_v48, %v1753_v20  ;;  %v1768_v42 = vadd.f32 %v2508_v36, %v1623_v14 }
 0x23e   : > { %v1762_v62 = vpop.f32.mrf.mxu1  ;;  %v1638_v44 = vadd.f32 %v2365_v32, %v1493_v35  ;;  %v2371_v14 = vadd.f32 %v3704_v52, %v3686_v43  ;;  %v1653_v58 = vadd.f32 %v2374_v21, %v1508_v37 }
 0x23f   : > { %1867 = vst [vmem:[%s3677_s9 + $0x20] sm:$0xff] %v1851_v6  ;;  %v1854_v54 = vmax.f32 %v1838_v2, 0.0  ;;  %v1837_v53 = vadd.f32 %v3651_v28, %v1814_v23  ;;  %v1817_v0 = vmul.f32 %v3640_v48, %v1768_v42  ;;  %v1763_v15 = vadd.f32 %v1762_v62, %v1618_v1 }
 0x240   : > { %v2511_v11 = vpop.f32.mrf.mxu1  ;;  %v1648_v45 = vadd.f32 %v2371_v14, %v1503_v41 }
 0x241   : > { %1870 = vst [vmem:[%s3677_s9 + $0x38] sm:$0xff] %v1854_v54  ;;  %v1853_v7 = vmax.f32 %v1837_v53, 0.0  ;;  %v1840_v16 = vadd.f32 %v3651_v28, %v1817_v0  ;;  %v1816_v10 = vmul.f32 %v3640_v48, %v1763_v15  ;;  %v1778_v25 = vadd.f32 %v2511_v11, %v1633_v18 }
 0x242   : > { %v1772_v24 = vpop.f32.mrf.mxu1 }
 0x243   : > { %1869 = vst [vmem:[%s3677_s9 + $0x30] sm:$0xff] %v1853_v7  ;;  %v1856_v57 = vmax.f32 %v1840_v16, 0.0  ;;  %v1839_v3 = vadd.f32 %v3651_v28, %v1816_v10  ;;  %v1819_v56 = vmul.f32 %v3640_v48, %v1778_v25  ;;  %v1773_v34 = vadd.f32 %v1772_v24, %v1628_v61 }
 0x244   : > { %v2514_v51 = vpop.f32.mrf.mxu1 }
 0x245   : > { %1872 = vst [vmem:[%s3677_s9 + $0x48] sm:$0xff] %v1856_v57  ;;  %v1855_v12 = vmax.f32 %v1839_v3, 0.0  ;;  %v1842_v13 = vadd.f32 %v3651_v28, %v1819_v56  ;;  %v1818_v30 = vmul.f32 %v3640_v48, %v1773_v34  ;;  %v1788_v17 = vadd.f32 %v2514_v51, %v1643_v60 }
 0x246   : > { %v1782_v31 = vpop.f32.mrf.mxu1 }
 0x247   : > { %1871 = vst [vmem:[%s3677_s9 + $0x40] sm:$0xff] %v1855_v12  ;;  %v1858_v8 = vmax.f32 %v1842_v13, 0.0  ;;  %v1841_v26 = vadd.f32 %v3651_v28, %v1818_v30  ;;  %v1821_v20 = vmul.f32 %v3640_v48, %v1788_v17  ;;  %v1783_v39 = vadd.f32 %v1782_v31, %v1638_v44 }
 0x248   : > { %v2517_v27 = vpop.f32.mrf.mxu1 }
 0x249   : > { %1874 = vst [vmem:[%s3677_s9 + $0x58] sm:$0xff] %v1858_v8  ;;  %v1857_v5 = vmax.f32 %v1841_v26, 0.0  ;;  %v1844_v19 = vadd.f32 %v3651_v28, %v1821_v20  ;;  %v1820_v43 = vmul.f32 %v3640_v48, %v1783_v39  ;;  %v1798_v52 = vadd.f32 %v2517_v27, %v1653_v58 }
 0x24a   : > { %v1792_v63 = vpop.f32.mrf.mxu1 }
 0x24b   : > { %1873 = vst [vmem:[%s3677_s9 + $0x50] sm:$0xff] %v1857_v5  ;;  %v1860_v33 = vmax.f32 %v1844_v19, 0.0  ;;  %v1843_v4 = vadd.f32 %v3651_v28, %v1820_v43  ;;  %v1823_v36 = vmul.f32 %v3640_v48, %v1798_v52  ;;  %v1793_v1 = vadd.f32 %v1792_v63, %v1648_v45 }
 0x24d   : > { %1876 = vst [vmem:[%s3677_s9 + $0x68] sm:$0xff] %v1860_v33  ;;  %v1859_v6 = vmax.f32 %v1843_v4, 0.0  ;;  %v1846_v2 = vadd.f32 %v3651_v28, %v1823_v36  ;;  %v1822_v23 = vmul.f32 %v3640_v48, %v1793_v1 }
 0x24f   : > { %1875 = vst [vmem:[%s3677_s9 + $0x60] sm:$0xff] %v1859_v6  ;;  %v1862_v42 = vmax.f32 %v1846_v2, 0.0  ;;  %v1845_v22 = vadd.f32 %v3651_v28, %v1822_v23 }
 0x251   : > { %1878 = vst [vmem:[%s3677_s9 + $0x78] sm:$0xff] %v1862_v42  ;;  %v1861_v47 = vmax.f32 %v1845_v22, 0.0 }
 0x253   : > { %1877 = vst [vmem:[%s3677_s9 + $0x70] sm:$0xff] %v1861_v47 }
 0x254 PF: > { %s17_s28 = sadd.s32 1, %s2597_s28   ;;  %s3828_s24 = smov %s2589_s26 }
 0x255   : > { %p14_p7 = scmp.ge.s32.totalorder %s17_s28, 6   ;;  %s3829_s25 = smov %s2593_s27 }
 0x256   : > { %s3830_s26 = smov %s3833_s29  ;;  %s3831_s27 = smov %s3837_s30 }
 0x257   :  { %16 = sbr.rel (!%p14_p7) target bundleno = 3 (0x3), region = 81 }

</bundles_post_ra>
